<compile_context>
chip_gen: v5e
topology: v5e:2x2
jax: 0.10.0
libtpu: 0.0.40
codegen_flags: <defaults>
</compile_context>

<pallas_src>
import jax
import jax.numpy as jnp
from jax import lax
from jax.experimental import pallas as pl
from jax.experimental.pallas import tpu as pltpu
import numpy as np

EPS = 1e-5
NEG_SLOPE = 0.01   # PyTorch LeakyReLU default


# ----------------------------- Pallas kernels ------------------------------

def _lrelu(y):
    return jnp.where(y >= 0, y, NEG_SLOPE * y)


def conv3x3_kernel(xp_ref, w_ref, o_ref, s_ref, q_ref):
    """3x3 conv on the zero-padded rows of one image + per-channel stats.

    xp_ref: (1, H+2, (W+2)*Cin)     zero-padded rows (lane-dense)
    w_ref : (3, (W+2)*Cin, W*Cout)  banded weights, one per dy tap
    o_ref : (1, H, W*Cout)          raw conv output (pre-BN)
    s_ref, q_ref: (1, 1, W*Cout)    per-image sum / sum-of-squares partials
    """
    H = o_ref.shape[1]
    xp = xp_ref[0]
    acc = jnp.dot(xp[0:H], w_ref[0], preferred_element_type=jnp.float32)
    acc += jnp.dot(xp[1:H + 1], w_ref[1], preferred_element_type=jnp.float32)
    acc += jnp.dot(xp[2:H + 2], w_ref[2], preferred_element_type=jnp.float32)
    o_ref[0] = acc
    s_ref[0] = jnp.sum(acc, axis=0, keepdims=True)
    q_ref[0] = jnp.sum(acc * acc, axis=0, keepdims=True)


def bn_conv3x3_kernel(xp_ref, a_ref, b_ref, m_ref, w_ref, o_ref, s_ref, q_ref):
    """Previous layer's BN+LeakyReLU fused into a 3x3 conv (+ stats)."""
    H = o_ref.shape[1]
    xp = xp_ref[0]                                          # raw padded rows
    xn = _lrelu(xp * a_ref[...] + b_ref[...]) * m_ref[...]  # mask keeps pads 0
    acc = jnp.dot(xn[0:H], w_ref[0], preferred_element_type=jnp.float32)
    acc += jnp.dot(xn[1:H + 1], w_ref[1], preferred_element_type=jnp.float32)
    acc += jnp.dot(xn[2:H + 2], w_ref[2], preferred_element_type=jnp.float32)
    o_ref[0] = acc
    s_ref[0] = jnp.sum(acc, axis=0, keepdims=True)
    q_ref[0] = jnp.sum(acc * acc, axis=0, keepdims=True)


def bn_conv1x1_kernel(x_ref, a_ref, b_ref, w_ref, o_ref, s_ref, q_ref):
    """BN+LeakyReLU prologue fused into a 1x1 conv (block-diagonal matmul)."""
    xn = _lrelu(x_ref[...] * a_ref[...] + b_ref[...])       # (TM, W*Cin)
    y = jnp.dot(xn, w_ref[...], preferred_element_type=jnp.float32)
    o_ref[...] = y
    s_ref[0] = jnp.sum(y, axis=0, keepdims=True)
    q_ref[0] = jnp.sum(y * y, axis=0, keepdims=True)


def bn_maxpool_kernel(x_ref, a_ref, b_ref, o_ref):
    """BN + LeakyReLU then 2x2/2 max-pool; pool pairs exposed by the layout."""
    x = x_ref[0]                                  # (Hh, 2, Wh, 2*C)
    y = _lrelu(x * a_ref[...] + b_ref[...])
    y = jnp.maximum(y[:, 0], y[:, 1])             # pool over row pairs
    C = o_ref.shape[-1]
    y = jnp.maximum(y[..., :C], y[..., C:])       # pool over column pairs
    o_ref[0] = y


# ------------------------------ layout glue ---------------------------------

def _banded_3x3_weight(w_hwio, W):
    """(3,3,Cin,Cout) HWIO -> (3, (W+2)*Cin, W*Cout) banded matrices."""
    kh, kw, Cin, Cout = w_hwio.shape
    wpos = jnp.arange(W)
    wd = jnp.zeros((kh, W + 2, Cin, W, Cout), jnp.float32)
    for dx in range(kw):
        wd = wd.at[:, wpos + dx, :, wpos, :].set(
            jnp.broadcast_to(w_hwio[:, dx][None], (W, kh, Cin, Cout)))
    return wd.reshape(kh, (W + 2) * Cin, W * Cout)


def _blockdiag_1x1_weight(w_io, W):
    """(Cin,Cout) -> block-diagonal (W*Cin, W*Cout)."""
    Cin, Cout = w_io.shape
    wpos = jnp.arange(W)
    bd = jnp.zeros((W, Cin, W, Cout), jnp.float32)
    bd = bd.at[wpos, :, wpos, :].set(jnp.broadcast_to(w_io[None], (W, Cin, Cout)))
    return bd.reshape(W * Cin, W * Cout)


def _pad_mask(H, W, C):
    m = jnp.zeros((H + 2, W + 2, C), jnp.float32)
    m = m.at[1:H + 1, 1:W + 1, :].set(1.0)
    return m.reshape(H + 2, (W + 2) * C)


def _tile_lanes(v, reps):
    return jnp.tile(v, reps).reshape(1, reps * v.shape[0])


def _finish_bn(ssum, ssq, gamma, beta, count):
    """Partial sums -> fused train-mode BN (scale, shift) per channel."""
    C = gamma.shape[0]
    s = ssum.reshape(-1, C).sum(axis=0)
    q = ssq.reshape(-1, C).sum(axis=0)
    mean = s / count
    var = jnp.maximum(q / count - mean * mean, 0.0)      # biased variance
    a = gamma * lax.rsqrt(var + EPS)
    b = beta - mean * a
    return a, b


def _row_tile(nh, cap=512):
    if nh <= cap:
        return nh
    for t in range(cap, 7, -1):
        if nh % t == 0 and t % 8 == 0:
            return t
    return nh


# ------------------------------ pallas wrappers ------------------------------

def _conv3x3_call(xp_rows, wd, H, W, Cout, fused_bn=None):
    """xp_rows: (N, H+2, (W+2)*Cin).  Returns conv rows (N, H, W*Cout) + stats."""
    N, Hp, WCp = xp_rows.shape
    WCo = W * Cout
    out_shapes = (jax.ShapeDtypeStruct((N, H, WCo), jnp.float32),
                  jax.ShapeDtypeStruct((N, 1, WCo), jnp.float32),
                  jax.ShapeDtypeStruct((N, 1, WCo), jnp.float32))
    out_specs = (pl.BlockSpec((1, H, WCo), lambda n: (n, 0, 0)),
                 pl.BlockSpec((1, 1, WCo), lambda n: (n, 0, 0)),
                 pl.BlockSpec((1, 1, WCo), lambda n: (n, 0, 0)))
    if fused_bn is None:
        kernel = conv3x3_kernel
        in_specs = [pl.BlockSpec((1, Hp, WCp), lambda n: (n, 0, 0)),
                    pl.BlockSpec(wd.shape, lambda n: (0, 0, 0))]
        args = (xp_rows, wd)
    else:
        a_vec, b_vec, mask = fused_bn
        kernel = bn_conv3x3_kernel
        in_specs = [pl.BlockSpec((1, Hp, WCp), lambda n: (n, 0, 0)),
                    pl.BlockSpec(a_vec.shape, lambda n: (0, 0)),
                    pl.BlockSpec(b_vec.shape, lambda n: (0, 0)),
                    pl.BlockSpec(mask.shape, lambda n: (0, 0)),
                    pl.BlockSpec(wd.shape, lambda n: (0, 0, 0))]
        args = (xp_rows, a_vec, b_vec, mask, wd)
    return pl.pallas_call(
        kernel,
        out_shape=out_shapes,
        grid=(N,),
        in_specs=in_specs,
        out_specs=out_specs,
        compiler_params=pltpu.CompilerParams(
            dimension_semantics=("parallel",)),
    )(*args)


def _bn_conv1x1_call(x_rows, a_vec, b_vec, wbd, WCo):
    NH, WCi = x_rows.shape
    TM = _row_tile(NH)
    T = NH // TM
    return pl.pallas_call(
        bn_conv1x1_kernel,
        out_shape=(jax.ShapeDtypeStruct((NH, WCo), jnp.float32),
                   jax.ShapeDtypeStruct((T, 1, WCo), jnp.float32),
                   jax.ShapeDtypeStruct((T, 1, WCo), jnp.float32)),
        grid=(T,),
        in_specs=[pl.BlockSpec((TM, WCi), lambda i: (i, 0)),
                  pl.BlockSpec((1, WCi), lambda i: (0, 0)),
                  pl.BlockSpec((1, WCi), lambda i: (0, 0)),
                  pl.BlockSpec((WCi, WCo), lambda i: (0, 0))],
        out_specs=(pl.BlockSpec((TM, WCo), lambda i: (i, 0)),
                   pl.BlockSpec((1, 1, WCo), lambda i: (i, 0, 0)),
                   pl.BlockSpec((1, 1, WCo), lambda i: (i, 0, 0))),
        compiler_params=pltpu.CompilerParams(
            dimension_semantics=("parallel",)),
    )(x_rows, a_vec, b_vec, wbd)


def _bn_maxpool_call(x5, a_vec, b_vec, C):
    N, Hh, _, Wh, twoC = x5.shape
    return pl.pallas_call(
        bn_maxpool_kernel,
        out_shape=jax.ShapeDtypeStruct((N, Hh, Wh, C), jnp.float32),
        grid=(N,),
        in_specs=[pl.BlockSpec((1, Hh, 2, Wh, twoC), lambda n: (n, 0, 0, 0, 0)),
                  pl.BlockSpec((1, twoC), lambda n: (0, 0)),
                  pl.BlockSpec((1, twoC), lambda n: (0, 0))],
        out_specs=pl.BlockSpec((1, Hh, Wh, C), lambda n: (n, 0, 0, 0)),
        compiler_params=pltpu.CompilerParams(
            dimension_semantics=("parallel",)),
    )(x5, a_vec, b_vec)


# ------------------------------ forward pass --------------------------------

@jax.jit
def hffc_block(x_nchw, p):
    x = jnp.transpose(x_nchw, (0, 2, 3, 1)).astype(jnp.float32)   # NCHW -> NHWC
    N, H, W, C1 = x.shape
    C2 = p["w2"].shape[-1]
    Hh, Wh = H // 2, W // 2
    cnt = float(N * H * W)

    # ---- conv1 (3x3) + stats -----------------------------------------------
    xp = jnp.pad(x, ((0, 0), (1, 1), (1, 1), (0, 0))).reshape(
        N, H + 2, (W + 2) * C1)
    wd1 = _banded_3x3_weight(p["w1"], W)
    y1, s1, q1 = _conv3x3_call(xp, wd1, H, W, C1)
    # conv biases are omitted: they cancel exactly under train-mode BatchNorm.
    a1, b1 = _finish_bn(s1, q1, p["g1"], p["bt1"], cnt)

    # ---- bn1 + lrelu + conv2 (1x1) + stats ----------------------------------
    wbd2 = _blockdiag_1x1_weight(p["w2"], W)
    y2, s2, q2 = _bn_conv1x1_call(y1.reshape(N * H, W * C1),
                                  _tile_lanes(a1, W), _tile_lanes(b1, W),
                                  wbd2, W * C2)
    a2, b2 = _finish_bn(s2, q2, p["g2"], p["bt2"], cnt)

    # TODO(synk): FFE (self.sf_fusion) definition is not provided in the
    # reference; treated as identity.

    # ---- bn2 + lrelu + conv3 (3x3) + stats ----------------------------------
    xp2 = jnp.pad(y2.reshape(N, H, W, C2), ((0, 0), (1, 1), (1, 1), (0, 0)))
    xp2 = xp2.reshape(N, H + 2, (W + 2) * C2)
    wd3 = _banded_3x3_weight(p["w3"], W)
    y3, s3, q3 = _conv3x3_call(
        xp2, wd3, H, W, C2,
        fused_bn=(_tile_lanes(a2, W + 2), _tile_lanes(b2, W + 2),
                  _pad_mask(H, W, C2)))
    a3, b3 = _finish_bn(s3, q3, p["g3"], p["bt3"], cnt)

    # ---- bn3 + lrelu + maxpool 2x2 ------------------------------------------
    x5 = y3.reshape(N, Hh, 2, Wh, 2 * C2)          # pure metadata reshape
    out = _bn_maxpool_call(x5, _tile_lanes(a3, 2), _tile_lanes(b3, 2), C2)
    return jnp.transpose(out, (0, 3, 1, 2))        # NHWC -> NCHW


# --------------------------- params & reference ----------------------------

def init_params(channels, key):
    C, C2 = channels, 2 * channels
    ks = jax.random.split(key, 6)
    return {
        "w1": 0.1 * jax.random.normal(ks[0], (3, 3, C, C), jnp.float32),
        "b1": 0.1 * jax.random.normal(ks[1], (C,), jnp.float32),
        "g1": jnp.ones((C,), jnp.float32),
        "bt1": jnp.zeros((C,), jnp.float32),
        "w2": 0.1 * jax.random.normal(ks[2], (C, C2), jnp.float32),
        "b2": 0.1 * jax.random.normal(ks[3], (C2,), jnp.float32),
        "g2": jnp.ones((C2,), jnp.float32),
        "bt2": jnp.zeros((C2,), jnp.float32),
        "w3": 0.1 * jax.random.normal(ks[4], (3, 3, C2, C2), jnp.float32),
        "b3": 0.1 * jax.random.normal(ks[5], (C2,), jnp.float32),
        "g3": jnp.ones((C2,), jnp.float32),
        "bt3": jnp.zeros((C2,), jnp.float32),
    }


def ref_forward(x_nchw, p):
    """Pure-JAX reference (PyTorch-faithful semantics, with conv biases)."""
    def bn_lrelu(y, g, b):
        m = jnp.mean(y, axis=(0, 1, 2), keepdims=True)
        v = jnp.mean((y - m) ** 2, axis=(0, 1, 2), keepdims=True)
        y = (y - m) * lax.rsqrt(v + EPS) * g + b
        return jnp.where(y >= 0, y, NEG_SLOPE * y)

    x = jnp.transpose(x_nchw, (0, 2, 3, 1)).astype(jnp.float32)
    dn = ("NHWC", "HWIO", "NHWC")
    x = lax.conv_general_dilated(x, p["w1"], (1, 1), "SAME",
                                 dimension_numbers=dn) + p["b1"]
    x = bn_lrelu(x, p["g1"], p["bt1"])
    x = jnp.einsum("nhwc,cd->nhwd", x, p["w2"]) + p["b2"]
    x = bn_lrelu(x, p["g2"], p["bt2"])
    x = lax.conv_general_dilated(x, p["w3"], (1, 1), "SAME",
                                 dimension_numbers=dn) + p["b3"]
    x = bn_lrelu(x, p["g3"], p["bt3"])
    x = lax.reduce_window(x, -jnp.inf, lax.max,
                          (1, 2, 2, 1), (1, 2, 2, 1), "VALID")
    return jnp.transpose(x, (0, 3, 1, 2))


# --------------------------------- main -------------------------------------

if __name__ == "__main__":
    channels = 8               # channels*2 = 16
    N, H, W = 2, 16, 16
    key = jax.random.PRNGKey(0)
    kx, kp = jax.random.split(key)
    x = jax.random.normal(kx, (N, channels, H, W), jnp.float32)  # NCHW input
    params = init_params(channels, kp)

    out = jax.block_until_ready(hffc_block(x, params))
    ref = jax.block_until_ready(ref_forward(x, params))

    assert out.shape == (N, 2 * channels, H // 2, W // 2), out.shape
    np.testing.assert_allclose(np.asarray(out), np.asarray(ref),
                               rtol=5e-3, atol=5e-3)
    print("KERNEL_OK")
</pallas_src>

<mosaic_0001>
module attributes {stable_mosaic.version = 11 : i64} {
  func.func @conv3x3_kernel(%arg0: i32, %arg1: memref<1x18x144xf32, #tpu.memory_space<vmem>>, %arg2: memref<3x144x128xf32, #tpu.memory_space<vmem>>, %arg3: memref<1x16x128xf32, #tpu.memory_space<vmem>>, %arg4: memref<1x1x128xf32, #tpu.memory_space<vmem>>, %arg5: memref<1x1x128xf32, #tpu.memory_space<vmem>>) attributes {dimension_semantics = [#tpu.dimension_semantics<parallel>], iteration_bounds = array<i64: 2>, scalar_prefetch = 0 : i64, scratch_operands = 0 : i64, tpu.core_type = #tpu.core_type<tc>, window_params = [{transform_indices = @transform_0, window_bounds = array<i64: 1, 18, 144>}, {pipeline_mode = #tpu.pipeline_mode<synchronous>, transform_indices = @transform_1, window_bounds = array<i64: 3, 144, 128>}, {transform_indices = @transform_2, window_bounds = array<i64: 1, 16, 128>}, {transform_indices = @transform_3, window_bounds = array<i64: 1, 1, 128>}, {transform_indices = @transform_4, window_bounds = array<i64: 1, 1, 128>}]} {
    %c0 = arith.constant 0 : index
    %c0_0 = arith.constant 0 : index
    %c0_1 = arith.constant 0 : index
    %0 = vector.load %arg1[%c0, %c0_0, %c0_1] : memref<1x18x144xf32, #tpu.memory_space<vmem>>, vector<1x18x144xf32>
    %1 = vector.shape_cast %0 : vector<1x18x144xf32> to vector<18x144xf32>
    %2 = vector.extract_strided_slice %1 {offsets = [0, 0], sizes = [16, 144], strides = [1, 1]} : vector<18x144xf32> to vector<16x144xf32>
    %c0_2 = arith.constant 0 : index
    %c0_3 = arith.constant 0 : index
    %c0_4 = arith.constant 0 : index
    %3 = vector.load %arg2[%c0_2, %c0_3, %c0_4] : memref<3x144x128xf32, #tpu.memory_space<vmem>>, vector<1x144x128xf32>
    %4 = vector.shape_cast %3 : vector<1x144x128xf32> to vector<144x128xf32>
    %cst = arith.constant dense<0.000000e+00> : vector<16x128xf32>
    %5 = tpu.matmul %2, %4, %cst {dimension_numbers = #tpu.dot_dimension_numbers<[1], [0], [0], [1], [0, 0, 1, 1], [], []>} : vector<16x144xf32>, vector<144x128xf32>, vector<16x128xf32> -> vector<16x128xf32>
    %6 = vector.extract_strided_slice %1 {offsets = [1, 0], sizes = [16, 144], strides = [1, 1]} : vector<18x144xf32> to vector<16x144xf32>
    %c1 = arith.constant 1 : index
    %c0_5 = arith.constant 0 : index
    %c0_6 = arith.constant 0 : index
    %7 = vector.load %arg2[%c1, %c0_5, %c0_6] : memref<3x144x128xf32, #tpu.memory_space<vmem>>, vector<1x144x128xf32>
    %8 = vector.shape_cast %7 : vector<1x144x128xf32> to vector<144x128xf32>
    %cst_7 = arith.constant dense<0.000000e+00> : vector<16x128xf32>
    %9 = tpu.matmul %6, %8, %cst_7 {dimension_numbers = #tpu.dot_dimension_numbers<[1], [0], [0], [1], [0, 0, 1, 1], [], []>} : vector<16x144xf32>, vector<144x128xf32>, vector<16x128xf32> -> vector<16x128xf32>
    %10 = arith.addf %5, %9 : vector<16x128xf32>
    %11 = vector.extract_strided_slice %1 {offsets = [2, 0], sizes = [16, 144], strides = [1, 1]} : vector<18x144xf32> to vector<16x144xf32>
    %c2 = arith.constant 2 : index
    %c0_8 = arith.constant 0 : index
    %c0_9 = arith.constant 0 : index
    %12 = vector.load %arg2[%c2, %c0_8, %c0_9] : memref<3x144x128xf32, #tpu.memory_space<vmem>>, vector<1x144x128xf32>
    %13 = vector.shape_cast %12 : vector<1x144x128xf32> to vector<144x128xf32>
    %cst_10 = arith.constant dense<0.000000e+00> : vector<16x128xf32>
    %14 = tpu.matmul %11, %13, %cst_10 {dimension_numbers = #tpu.dot_dimension_numbers<[1], [0], [0], [1], [0, 0, 1, 1], [], []>} : vector<16x144xf32>, vector<144x128xf32>, vector<16x128xf32> -> vector<16x128xf32>
    %15 = arith.addf %10, %14 : vector<16x128xf32>
    %c0_11 = arith.constant 0 : index
    %c0_12 = arith.constant 0 : index
    %c0_13 = arith.constant 0 : index
    %16 = vector.load %arg3[%c0_11, %c0_12, %c0_13] : memref<1x16x128xf32, #tpu.memory_space<vmem>>, vector<1x16x128xf32>
    %17 = vector.shape_cast %16 : vector<1x16x128xf32> to vector<16x128xf32>
    %18 = vector.shape_cast %15 : vector<16x128xf32> to vector<1x16x128xf32>
    tpu.vector_store %arg3[%c0_11, %c0_12, %c0_13], %18 {strides = array<i32>} : memref<1x16x128xf32, #tpu.memory_space<vmem>>, vector<1x16x128xf32>,
    %cst_14 = arith.constant dense<0.000000e+00> : vector<128xf32>
    %19 = vector.multi_reduction <add>, %15, %cst_14 [0] : vector<16x128xf32> to vector<128xf32>
    %20 = vector.shape_cast %19 : vector<128xf32> to vector<1x128xf32>
    %c0_15 = arith.constant 0 : index
    %c0_16 = arith.constant 0 : index
    %c0_17 = arith.constant 0 : index
    %21 = vector.load %arg4[%c0_15, %c0_16, %c0_17] : memref<1x1x128xf32, #tpu.memory_space<vmem>>, vector<1x1x128xf32>
    %22 = vector.shape_cast %21 : vector<1x1x128xf32> to vector<1x128xf32>
    %23 = vector.shape_cast %20 : vector<1x128xf32> to vector<1x1x128xf32>
    tpu.vector_store %arg4[%c0_15, %c0_16, %c0_17], %23 {strides = array<i32>} : memref<1x1x128xf32, #tpu.memory_space<vmem>>, vector<1x1x128xf32>,
    %24 = arith.mulf %15, %15 : vector<16x128xf32>
    %cst_18 = arith.constant dense<0.000000e+00> : vector<128xf32>
    %25 = vector.multi_reduction <add>, %24, %cst_18 [0] : vector<16x128xf32> to vector<128xf32>
    %26 = vector.shape_cast %25 : vector<128xf32> to vector<1x128xf32>
    %c0_19 = arith.constant 0 : index
    %c0_20 = arith.constant 0 : index
    %c0_21 = arith.constant 0 : index
    %27 = vector.load %arg5[%c0_19, %c0_20, %c0_21] : memref<1x1x128xf32, #tpu.memory_space<vmem>>, vector<1x1x128xf32>
    %28 = vector.shape_cast %27 : vector<1x1x128xf32> to vector<1x128xf32>
    %29 = vector.shape_cast %26 : vector<1x128xf32> to vector<1x1x128xf32>
    tpu.vector_store %arg5[%c0_19, %c0_20, %c0_21], %29 {strides = array<i32>} : memref<1x1x128xf32, #tpu.memory_space<vmem>>, vector<1x1x128xf32>,
    return
  }
  func.func @transform_0(%arg0: i32) -> (i32, i32, i32) {
    %c0_i32 = arith.constant 0 : i32
    %c0_i32_0 = arith.constant 0 : i32
    %c0_i32_1 = arith.constant 0 : i32
    return %arg0, %c0_i32, %c0_i32_0 : i32, i32, i32
  }
  func.func @transform_1(%arg0: i32) -> (i32, i32, i32) {
    %c0_i32 = arith.constant 0 : i32
    %c0_i32_0 = arith.constant 0 : i32
    %c0_i32_1 = arith.constant 0 : i32
    %c0_i32_2 = arith.constant 0 : i32
    return %c0_i32, %c0_i32_0, %c0_i32_1 : i32, i32, i32
  }
  func.func @transform_2(%arg0: i32) -> (i32, i32, i32) {
    %c0_i32 = arith.constant 0 : i32
    %c0_i32_0 = arith.constant 0 : i32
    %c0_i32_1 = arith.constant 0 : i32
    return %arg0, %c0_i32, %c0_i32_0 : i32, i32, i32
  }
  func.func @transform_3(%arg0: i32) -> (i32, i32, i32) {
    %c0_i32 = arith.constant 0 : i32
    %c0_i32_0 = arith.constant 0 : i32
    %c0_i32_1 = arith.constant 0 : i32
    return %arg0, %c0_i32, %c0_i32_0 : i32, i32, i32
  }
  func.func @transform_4(%arg0: i32) -> (i32, i32, i32) {
    %c0_i32 = arith.constant 0 : i32
    %c0_i32_0 = arith.constant 0 : i32
    %c0_i32_1 = arith.constant 0 : i32
    return %arg0, %c0_i32, %c0_i32_0 : i32, i32, i32
  }
}

module attributes {stable_mosaic.version = 11 : i64} {
  func.func @bn_conv1x1_kernel(%arg0: i32, %arg1: memref<32x128xf32, #tpu.memory_space<vmem>>, %arg2: memref<1x128xf32, #tpu.memory_space<vmem>>, %arg3: memref<1x128xf32, #tpu.memory_space<vmem>>, %arg4: memref<128x256xf32, #tpu.memory_space<vmem>>, %arg5: memref<32x256xf32, #tpu.memory_space<vmem>>, %arg6: memref<1x1x256xf32, #tpu.memory_space<vmem>>, %arg7: memref<1x1x256xf32, #tpu.memory_space<vmem>>) attributes {dimension_semantics = [#tpu.dimension_semantics<parallel>], iteration_bounds = array<i64: 1>, scalar_prefetch = 0 : i64, scratch_operands = 0 : i64, tpu.core_type = #tpu.core_type<tc>, window_params = [{transform_indices = @transform_0, window_bounds = array<i64: 32, 128>}, {pipeline_mode = #tpu.pipeline_mode<synchronous>, transform_indices = @transform_1, window_bounds = array<i64: 1, 128>}, {pipeline_mode = #tpu.pipeline_mode<synchronous>, transform_indices = @transform_2, window_bounds = array<i64: 1, 128>}, {pipeline_mode = #tpu.pipeline_mode<synchronous>, transform_indices = @transform_3, window_bounds = array<i64: 128, 256>}, {transform_indices = @transform_4, window_bounds = array<i64: 32, 256>}, {transform_indices = @transform_5, window_bounds = array<i64: 1, 1, 256>}, {transform_indices = @transform_6, window_bounds = array<i64: 1, 1, 256>}]} {
    %c0 = arith.constant 0 : index
    %c0_0 = arith.constant 0 : index
    %0 = vector.load %arg1[%c0, %c0_0] : memref<32x128xf32, #tpu.memory_space<vmem>>, vector<32x128xf32>
    %c0_1 = arith.constant 0 : index
    %c0_2 = arith.constant 0 : index
    %1 = vector.load %arg2[%c0_1, %c0_2] : memref<1x128xf32, #tpu.memory_space<vmem>>, vector<1x128xf32>
    %2 = vector.broadcast %1 : vector<1x128xf32> to vector<32x128xf32>
    %3 = arith.mulf %0, %2 : vector<32x128xf32>
    %c0_3 = arith.constant 0 : index
    %c0_4 = arith.constant 0 : index
    %4 = vector.load %arg3[%c0_3, %c0_4] : memref<1x128xf32, #tpu.memory_space<vmem>>, vector<1x128xf32>
    %5 = vector.broadcast %4 : vector<1x128xf32> to vector<32x128xf32>
    %6 = arith.addf %3, %5 : vector<32x128xf32>
    %cst = arith.constant 0.000000e+00 : f32
    %7 = vector.broadcast %cst : f32 to vector<32x128xf32>
    %8 = arith.cmpf oge, %6, %7 : vector<32x128xf32>
    %cst_5 = arith.constant 0.00999999977 : f32
    %9 = vector.broadcast %cst_5 : f32 to vector<32x128xf32>
    %10 = arith.mulf %9, %6 : vector<32x128xf32>
    %11 = arith.select %8, %6, %10 : vector<32x128xi1>, vector<32x128xf32>
    %c0_6 = arith.constant 0 : index
    %c0_7 = arith.constant 0 : index
    %12 = vector.load %arg4[%c0_6, %c0_7] : memref<128x256xf32, #tpu.memory_space<vmem>>, vector<128x256xf32>
    %cst_8 = arith.constant dense<0.000000e+00> : vector<32x256xf32>
    %13 = tpu.matmul %11, %12, %cst_8 {dimension_numbers = #tpu.dot_dimension_numbers<[1], [0], [0], [1], [0, 0, 1, 1], [], []>} : vector<32x128xf32>, vector<128x256xf32>, vector<32x256xf32> -> vector<32x256xf32>
    %c0_9 = arith.constant 0 : index
    %c0_10 = arith.constant 0 : index
    %14 = vector.load %arg5[%c0_9, %c0_10] : memref<32x256xf32, #tpu.memory_space<vmem>>, vector<32x256xf32>
    tpu.vector_store %arg5[%c0_9, %c0_10], %13 {strides = array<i32>} : memref<32x256xf32, #tpu.memory_space<vmem>>, vector<32x256xf32>,
    %cst_11 = arith.constant dense<0.000000e+00> : vector<256xf32>
    %15 = vector.multi_reduction <add>, %13, %cst_11 [0] : vector<32x256xf32> to vector<256xf32>
    %16 = vector.shape_cast %15 : vector<256xf32> to vector<1x256xf32>
    %c0_12 = arith.constant 0 : index
    %c0_13 = arith.constant 0 : index
    %c0_14 = arith.constant 0 : index
    %17 = vector.load %arg6[%c0_12, %c0_13, %c0_14] : memref<1x1x256xf32, #tpu.memory_space<vmem>>, vector<1x1x256xf32>
    %18 = vector.shape_cast %17 : vector<1x1x256xf32> to vector<1x256xf32>
    %19 = vector.shape_cast %16 : vector<1x256xf32> to vector<1x1x256xf32>
    tpu.vector_store %arg6[%c0_12, %c0_13, %c0_14], %19 {strides = array<i32>} : memref<1x1x256xf32, #tpu.memory_space<vmem>>, vector<1x1x256xf32>,
    %20 = arith.mulf %13, %13 : vector<32x256xf32>
    %cst_15 = arith.constant dense<0.000000e+00> : vector<256xf32>
    %21 = vector.multi_reduction <add>, %20, %cst_15 [0] : vector<32x256xf32> to vector<256xf32>
    %22 = vector.shape_cast %21 : vector<256xf32> to vector<1x256xf32>
    %c0_16 = arith.constant 0 : index
    %c0_17 = arith.constant 0 : index
    %c0_18 = arith.constant 0 : index
    %23 = vector.load %arg7[%c0_16, %c0_17, %c0_18] : memref<1x1x256xf32, #tpu.memory_space<vmem>>, vector<1x1x256xf32>
    %24 = vector.shape_cast %23 : vector<1x1x256xf32> to vector<1x256xf32>
    %25 = vector.shape_cast %22 : vector<1x256xf32> to vector<1x1x256xf32>
    tpu.vector_store %arg7[%c0_16, %c0_17, %c0_18], %25 {strides = array<i32>} : memref<1x1x256xf32, #tpu.memory_space<vmem>>, vector<1x1x256xf32>,
    return
  }
  func.func @transform_0(%arg0: i32) -> (i32, i32) {
    %c0_i32 = arith.constant 0 : i32
    %c0_i32_0 = arith.constant 0 : i32
    return %arg0, %c0_i32 : i32, i32
  }
  func.func @transform_1(%arg0: i32) -> (i32, i32) {
    %c0_i32 = arith.constant 0 : i32
    %c0_i32_0 = arith.constant 0 : i32
    %c0_i32_1 = arith.constant 0 : i32
    return %c0_i32, %c0_i32_0 : i32, i32
  }
  func.func @transform_2(%arg0: i32) -> (i32, i32) {
    %c0_i32 = arith.constant 0 : i32
    %c0_i32_0 = arith.constant 0 : i32
    %c0_i32_1 = arith.constant 0 : i32
    return %c0_i32, %c0_i32_0 : i32, i32
  }
  func.func @transform_3(%arg0: i32) -> (i32, i32) {
    %c0_i32 = arith.constant 0 : i32
    %c0_i32_0 = arith.constant 0 : i32
    %c0_i32_1 = arith.constant 0 : i32
    return %c0_i32, %c0_i32_0 : i32, i32
  }
  func.func @transform_4(%arg0: i32) -> (i32, i32) {
    %c0_i32 = arith.constant 0 : i32
    %c0_i32_0 = arith.constant 0 : i32
    return %arg0, %c0_i32 : i32, i32
  }
  func.func @transform_5(%arg0: i32) -> (i32, i32, i32) {
    %c0_i32 = arith.constant 0 : i32
    %c0_i32_0 = arith.constant 0 : i32
    %c0_i32_1 = arith.constant 0 : i32
    return %arg0, %c0_i32, %c0_i32_0 : i32, i32, i32
  }
  func.func @transform_6(%arg0: i32) -> (i32, i32, i32) {
    %c0_i32 = arith.constant 0 : i32
    %c0_i32_0 = arith.constant 0 : i32
    %c0_i32_1 = arith.constant 0 : i32
    return %arg0, %c0_i32, %c0_i32_0 : i32, i32, i32
  }
}

module attributes {stable_mosaic.version = 11 : i64} {
  func.func @bn_conv3x3_kernel(%arg0: i32, %arg1: memref<1x18x288xf32, #tpu.memory_space<vmem>>, %arg2: memref<1x288xf32, #tpu.memory_space<vmem>>, %arg3: memref<1x288xf32, #tpu.memory_space<vmem>>, %arg4: memref<18x288xf32, #tpu.memory_space<vmem>>, %arg5: memref<3x288x256xf32, #tpu.memory_space<vmem>>, %arg6: memref<1x16x256xf32, #tpu.memory_space<vmem>>, %arg7: memref<1x1x256xf32, #tpu.memory_space<vmem>>, %arg8: memref<1x1x256xf32, #tpu.memory_space<vmem>>) attributes {dimension_semantics = [#tpu.dimension_semantics<parallel>], iteration_bounds = array<i64: 2>, scalar_prefetch = 0 : i64, scratch_operands = 0 : i64, tpu.core_type = #tpu.core_type<tc>, window_params = [{transform_indices = @transform_0, window_bounds = array<i64: 1, 18, 288>}, {pipeline_mode = #tpu.pipeline_mode<synchronous>, transform_indices = @transform_1, window_bounds = array<i64: 1, 288>}, {pipeline_mode = #tpu.pipeline_mode<synchronous>, transform_indices = @transform_2, window_bounds = array<i64: 1, 288>}, {pipeline_mode = #tpu.pipeline_mode<synchronous>, transform_indices = @transform_3, window_bounds = array<i64: 18, 288>}, {pipeline_mode = #tpu.pipeline_mode<synchronous>, transform_indices = @transform_4, window_bounds = array<i64: 3, 288, 256>}, {transform_indices = @transform_5, window_bounds = array<i64: 1, 16, 256>}, {transform_indices = @transform_6, window_bounds = array<i64: 1, 1, 256>}, {transform_indices = @transform_7, window_bounds = array<i64: 1, 1, 256>}]} {
    %c0 = arith.constant 0 : index
    %c0_0 = arith.constant 0 : index
    %c0_1 = arith.constant 0 : index
    %0 = vector.load %arg1[%c0, %c0_0, %c0_1] : memref<1x18x288xf32, #tpu.memory_space<vmem>>, vector<1x18x288xf32>
    %1 = vector.shape_cast %0 : vector<1x18x288xf32> to vector<18x288xf32>
    %c0_2 = arith.constant 0 : index
    %c0_3 = arith.constant 0 : index
    %2 = vector.load %arg2[%c0_2, %c0_3] : memref<1x288xf32, #tpu.memory_space<vmem>>, vector<1x288xf32>
    %3 = vector.broadcast %2 : vector<1x288xf32> to vector<18x288xf32>
    %4 = arith.mulf %1, %3 : vector<18x288xf32>
    %c0_4 = arith.constant 0 : index
    %c0_5 = arith.constant 0 : index
    %5 = vector.load %arg3[%c0_4, %c0_5] : memref<1x288xf32, #tpu.memory_space<vmem>>, vector<1x288xf32>
    %6 = vector.broadcast %5 : vector<1x288xf32> to vector<18x288xf32>
    %7 = arith.addf %4, %6 : vector<18x288xf32>
    %cst = arith.constant 0.000000e+00 : f32
    %8 = vector.broadcast %cst : f32 to vector<18x288xf32>
    %9 = arith.cmpf oge, %7, %8 : vector<18x288xf32>
    %cst_6 = arith.constant 0.00999999977 : f32
    %10 = vector.broadcast %cst_6 : f32 to vector<18x288xf32>
    %11 = arith.mulf %10, %7 : vector<18x288xf32>
    %12 = arith.select %9, %7, %11 : vector<18x288xi1>, vector<18x288xf32>
    %c0_7 = arith.constant 0 : index
    %c0_8 = arith.constant 0 : index
    %13 = vector.load %arg4[%c0_7, %c0_8] : memref<18x288xf32, #tpu.memory_space<vmem>>, vector<18x288xf32>
    %14 = arith.mulf %12, %13 : vector<18x288xf32>
    %15 = vector.extract_strided_slice %14 {offsets = [0, 0], sizes = [16, 288], strides = [1, 1]} : vector<18x288xf32> to vector<16x288xf32>
    %c0_9 = arith.constant 0 : index
    %c0_10 = arith.constant 0 : index
    %c0_11 = arith.constant 0 : index
    %16 = vector.load %arg5[%c0_9, %c0_10, %c0_11] : memref<3x288x256xf32, #tpu.memory_space<vmem>>, vector<1x288x256xf32>
    %17 = vector.shape_cast %16 : vector<1x288x256xf32> to vector<288x256xf32>
    %cst_12 = arith.constant dense<0.000000e+00> : vector<16x256xf32>
    %18 = tpu.matmul %15, %17, %cst_12 {dimension_numbers = #tpu.dot_dimension_numbers<[1], [0], [0], [1], [0, 0, 1, 1], [], []>} : vector<16x288xf32>, vector<288x256xf32>, vector<16x256xf32> -> vector<16x256xf32>
    %19 = vector.extract_strided_slice %14 {offsets = [1, 0], sizes = [16, 288], strides = [1, 1]} : vector<18x288xf32> to vector<16x288xf32>
    %c1 = arith.constant 1 : index
    %c0_13 = arith.constant 0 : index
    %c0_14 = arith.constant 0 : index
    %20 = vector.load %arg5[%c1, %c0_13, %c0_14] : memref<3x288x256xf32, #tpu.memory_space<vmem>>, vector<1x288x256xf32>
    %21 = vector.shape_cast %20 : vector<1x288x256xf32> to vector<288x256xf32>
    %cst_15 = arith.constant dense<0.000000e+00> : vector<16x256xf32>
    %22 = tpu.matmul %19, %21, %cst_15 {dimension_numbers = #tpu.dot_dimension_numbers<[1], [0], [0], [1], [0, 0, 1, 1], [], []>} : vector<16x288xf32>, vector<288x256xf32>, vector<16x256xf32> -> vector<16x256xf32>
    %23 = arith.addf %18, %22 : vector<16x256xf32>
    %24 = vector.extract_strided_slice %14 {offsets = [2, 0], sizes = [16, 288], strides = [1, 1]} : vector<18x288xf32> to vector<16x288xf32>
    %c2 = arith.constant 2 : index
    %c0_16 = arith.constant 0 : index
    %c0_17 = arith.constant 0 : index
    %25 = vector.load %arg5[%c2, %c0_16, %c0_17] : memref<3x288x256xf32, #tpu.memory_space<vmem>>, vector<1x288x256xf32>
    %26 = vector.shape_cast %25 : vector<1x288x256xf32> to vector<288x256xf32>
    %cst_18 = arith.constant dense<0.000000e+00> : vector<16x256xf32>
    %27 = tpu.matmul %24, %26, %cst_18 {dimension_numbers = #tpu.dot_dimension_numbers<[1], [0], [0], [1], [0, 0, 1, 1], [], []>} : vector<16x288xf32>, vector<288x256xf32>, vector<16x256xf32> -> vector<16x256xf32>
    %28 = arith.addf %23, %27 : vector<16x256xf32>
    %c0_19 = arith.constant 0 : index
    %c0_20 = arith.constant 0 : index
    %c0_21 = arith.constant 0 : index
    %29 = vector.load %arg6[%c0_19, %c0_20, %c0_21] : memref<1x16x256xf32, #tpu.memory_space<vmem>>, vector<1x16x256xf32>
    %30 = vector.shape_cast %29 : vector<1x16x256xf32> to vector<16x256xf32>
    %31 = vector.shape_cast %28 : vector<16x256xf32> to vector<1x16x256xf32>
    tpu.vector_store %arg6[%c0_19, %c0_20, %c0_21], %31 {strides = array<i32>} : memref<1x16x256xf32, #tpu.memory_space<vmem>>, vector<1x16x256xf32>,
    %cst_22 = arith.constant dense<0.000000e+00> : vector<256xf32>
    %32 = vector.multi_reduction <add>, %28, %cst_22 [0] : vector<16x256xf32> to vector<256xf32>
    %33 = vector.shape_cast %32 : vector<256xf32> to vector<1x256xf32>
    %c0_23 = arith.constant 0 : index
    %c0_24 = arith.constant 0 : index
    %c0_25 = arith.constant 0 : index
    %34 = vector.load %arg7[%c0_23, %c0_24, %c0_25] : memref<1x1x256xf32, #tpu.memory_space<vmem>>, vector<1x1x256xf32>
    %35 = vector.shape_cast %34 : vector<1x1x256xf32> to vector<1x256xf32>
    %36 = vector.shape_cast %33 : vector<1x256xf32> to vector<1x1x256xf32>
    tpu.vector_store %arg7[%c0_23, %c0_24, %c0_25], %36 {strides = array<i32>} : memref<1x1x256xf32, #tpu.memory_space<vmem>>, vector<1x1x256xf32>,
    %37 = arith.mulf %28, %28 : vector<16x256xf32>
    %cst_26 = arith.constant dense<0.000000e+00> : vector<256xf32>
    %38 = vector.multi_reduction <add>, %37, %cst_26 [0] : vector<16x256xf32> to vector<256xf32>
    %39 = vector.shape_cast %38 : vector<256xf32> to vector<1x256xf32>
    %c0_27 = arith.constant 0 : index
    %c0_28 = arith.constant 0 : index
    %c0_29 = arith.constant 0 : index
    %40 = vector.load %arg8[%c0_27, %c0_28, %c0_29] : memref<1x1x256xf32, #tpu.memory_space<vmem>>, vector<1x1x256xf32>
    %41 = vector.shape_cast %40 : vector<1x1x256xf32> to vector<1x256xf32>
    %42 = vector.shape_cast %39 : vector<1x256xf32> to vector<1x1x256xf32>
    tpu.vector_store %arg8[%c0_27, %c0_28, %c0_29], %42 {strides = array<i32>} : memref<1x1x256xf32, #tpu.memory_space<vmem>>, vector<1x1x256xf32>,
    return
  }
  func.func @transform_0(%arg0: i32) -> (i32, i32, i32) {
    %c0_i32 = arith.constant 0 : i32
    %c0_i32_0 = arith.constant 0 : i32
    %c0_i32_1 = arith.constant 0 : i32
    return %arg0, %c0_i32, %c0_i32_0 : i32, i32, i32
  }
  func.func @transform_1(%arg0: i32) -> (i32, i32) {
    %c0_i32 = arith.constant 0 : i32
    %c0_i32_0 = arith.constant 0 : i32
    %c0_i32_1 = arith.constant 0 : i32
    return %c0_i32, %c0_i32_0 : i32, i32
  }
  func.func @transform_2(%arg0: i32) -> (i32, i32) {
    %c0_i32 = arith.constant 0 : i32
    %c0_i32_0 = arith.constant 0 : i32
    %c0_i32_1 = arith.constant 0 : i32
    return %c0_i32, %c0_i32_0 : i32, i32
  }
  func.func @transform_3(%arg0: i32) -> (i32, i32) {
    %c0_i32 = arith.constant 0 : i32
    %c0_i32_0 = arith.constant 0 : i32
    %c0_i32_1 = arith.constant 0 : i32
    return %c0_i32, %c0_i32_0 : i32, i32
  }
  func.func @transform_4(%arg0: i32) -> (i32, i32, i32) {
    %c0_i32 = arith.constant 0 : i32
    %c0_i32_0 = arith.constant 0 : i32
    %c0_i32_1 = arith.constant 0 : i32
    %c0_i32_2 = arith.constant 0 : i32
    return %c0_i32, %c0_i32_0, %c0_i32_1 : i32, i32, i32
  }
  func.func @transform_5(%arg0: i32) -> (i32, i32, i32) {
    %c0_i32 = arith.constant 0 : i32
    %c0_i32_0 = arith.constant 0 : i32
    %c0_i32_1 = arith.constant 0 : i32
    return %arg0, %c0_i32, %c0_i32_0 : i32, i32, i32
  }
  func.func @transform_6(%arg0: i32) -> (i32, i32, i32) {
    %c0_i32 = arith.constant 0 : i32
    %c0_i32_0 = arith.constant 0 : i32
    %c0_i32_1 = arith.constant 0 : i32
    return %arg0, %c0_i32, %c0_i32_0 : i32, i32, i32
  }
  func.func @transform_7(%arg0: i32) -> (i32, i32, i32) {
    %c0_i32 = arith.constant 0 : i32
    %c0_i32_0 = arith.constant 0 : i32
    %c0_i32_1 = arith.constant 0 : i32
    return %arg0, %c0_i32, %c0_i32_0 : i32, i32, i32
  }
}

module attributes {stable_mosaic.version = 11 : i64} {
  func.func @bn_maxpool_kernel(%arg0: i32, %arg1: memref<1x8x2x8x32xf32, #tpu.memory_space<vmem>>, %arg2: memref<1x32xf32, #tpu.memory_space<vmem>>, %arg3: memref<1x32xf32, #tpu.memory_space<vmem>>, %arg4: memref<1x8x8x16xf32, #tpu.memory_space<vmem>>) attributes {dimension_semantics = [#tpu.dimension_semantics<parallel>], iteration_bounds = array<i64: 2>, scalar_prefetch = 0 : i64, scratch_operands = 0 : i64, tpu.core_type = #tpu.core_type<tc>, window_params = [{transform_indices = @transform_0, window_bounds = array<i64: 1, 8, 2, 8, 32>}, {pipeline_mode = #tpu.pipeline_mode<synchronous>, transform_indices = @transform_1, window_bounds = array<i64: 1, 32>}, {pipeline_mode = #tpu.pipeline_mode<synchronous>, transform_indices = @transform_2, window_bounds = array<i64: 1, 32>}, {transform_indices = @transform_3, window_bounds = array<i64: 1, 8, 8, 16>}]} {
    %c0 = arith.constant 0 : index
    %c0_0 = arith.constant 0 : index
    %c0_1 = arith.constant 0 : index
    %c0_2 = arith.constant 0 : index
    %c0_3 = arith.constant 0 : index
    %0 = vector.load %arg1[%c0, %c0_0, %c0_1, %c0_2, %c0_3] : memref<1x8x2x8x32xf32, #tpu.memory_space<vmem>>, vector<1x8x2x8x32xf32>
    %1 = vector.shape_cast %0 : vector<1x8x2x8x32xf32> to vector<8x2x8x32xf32>
    %c0_4 = arith.constant 0 : index
    %c0_5 = arith.constant 0 : index
    %2 = vector.load %arg2[%c0_4, %c0_5] : memref<1x32xf32, #tpu.memory_space<vmem>>, vector<1x32xf32>
    %3 = vector.shape_cast %2 : vector<1x32xf32> to vector<1x1x1x32xf32>
    %4 = vector.broadcast %3 : vector<1x1x1x32xf32> to vector<8x2x8x32xf32>
    %5 = arith.mulf %1, %4 : vector<8x2x8x32xf32>
    %c0_6 = arith.constant 0 : index
    %c0_7 = arith.constant 0 : index
    %6 = vector.load %arg3[%c0_6, %c0_7] : memref<1x32xf32, #tpu.memory_space<vmem>>, vector<1x32xf32>
    %7 = vector.shape_cast %6 : vector<1x32xf32> to vector<1x1x1x32xf32>
    %8 = vector.broadcast %7 : vector<1x1x1x32xf32> to vector<8x2x8x32xf32>
    %9 = arith.addf %5, %8 : vector<8x2x8x32xf32>
    %cst = arith.constant 0.000000e+00 : f32
    %10 = vector.broadcast %cst : f32 to vector<8x2x8x32xf32>
    %11 = arith.cmpf oge, %9, %10 : vector<8x2x8x32xf32>
    %cst_8 = arith.constant 0.00999999977 : f32
    %12 = vector.broadcast %cst_8 : f32 to vector<8x2x8x32xf32>
    %13 = arith.mulf %12, %9 : vector<8x2x8x32xf32>
    %14 = arith.select %11, %9, %13 : vector<8x2x8x32xi1>, vector<8x2x8x32xf32>
    %15 = vector.extract_strided_slice %14 {offsets = [0, 0, 0, 0], sizes = [8, 1, 8, 32], strides = [1, 1, 1, 1]} : vector<8x2x8x32xf32> to vector<8x1x8x32xf32>
    %16 = vector.shape_cast %15 : vector<8x1x8x32xf32> to vector<8x8x32xf32>
    %17 = vector.extract_strided_slice %14 {offsets = [0, 1, 0, 0], sizes = [8, 1, 8, 32], strides = [1, 1, 1, 1]} : vector<8x2x8x32xf32> to vector<8x1x8x32xf32>
    %18 = vector.shape_cast %17 : vector<8x1x8x32xf32> to vector<8x8x32xf32>
    %19 = arith.maximumf %16, %18 : vector<8x8x32xf32>
    %20 = vector.extract_strided_slice %19 {offsets = [0, 0, 0], sizes = [8, 8, 16], strides = [1, 1, 1]} : vector<8x8x32xf32> to vector<8x8x16xf32>
    %21 = vector.extract_strided_slice %19 {offsets = [0, 0, 16], sizes = [8, 8, 16], strides = [1, 1, 1]} : vector<8x8x32xf32> to vector<8x8x16xf32>
    %22 = arith.maximumf %20, %21 : vector<8x8x16xf32>
    %c0_9 = arith.constant 0 : index
    %c0_10 = arith.constant 0 : index
    %c0_11 = arith.constant 0 : index
    %c0_12 = arith.constant 0 : index
    %23 = vector.load %arg4[%c0_9, %c0_10, %c0_11, %c0_12] : memref<1x8x8x16xf32, #tpu.memory_space<vmem>>, vector<1x8x8x16xf32>
    %24 = vector.shape_cast %23 : vector<1x8x8x16xf32> to vector<8x8x16xf32>
    %25 = vector.shape_cast %22 : vector<8x8x16xf32> to vector<1x8x8x16xf32>
    tpu.vector_store %arg4[%c0_9, %c0_10, %c0_11, %c0_12], %25 {strides = array<i32>} : memref<1x8x8x16xf32, #tpu.memory_space<vmem>>, vector<1x8x8x16xf32>,
    return
  }
  func.func @transform_0(%arg0: i32) -> (i32, i32, i32, i32, i32) {
    %c0_i32 = arith.constant 0 : i32
    %c0_i32_0 = arith.constant 0 : i32
    %c0_i32_1 = arith.constant 0 : i32
    %c0_i32_2 = arith.constant 0 : i32
    %c0_i32_3 = arith.constant 0 : i32
    return %arg0, %c0_i32, %c0_i32_0, %c0_i32_1, %c0_i32_2 : i32, i32, i32, i32, i32
  }
  func.func @transform_1(%arg0: i32) -> (i32, i32) {
    %c0_i32 = arith.constant 0 : i32
    %c0_i32_0 = arith.constant 0 : i32
    %c0_i32_1 = arith.constant 0 : i32
    return %c0_i32, %c0_i32_0 : i32, i32
  }
  func.func @transform_2(%arg0: i32) -> (i32, i32) {
    %c0_i32 = arith.constant 0 : i32
    %c0_i32_0 = arith.constant 0 : i32
    %c0_i32_1 = arith.constant 0 : i32
    return %c0_i32, %c0_i32_0 : i32, i32
  }
  func.func @transform_3(%arg0: i32) -> (i32, i32, i32, i32) {
    %c0_i32 = arith.constant 0 : i32
    %c0_i32_0 = arith.constant 0 : i32
    %c0_i32_1 = arith.constant 0 : i32
    %c0_i32_2 = arith.constant 0 : i32
    return %arg0, %c0_i32, %c0_i32_0, %c0_i32_1 : i32, i32, i32, i32
  }
}

</mosaic_0001>

<bundles_post_ra>
// kernel: tile.33
= control target key start
LH: loop header
LB: loop body
LE: loop exit
PB: predicated region body
PF: predicated region fallthrough
CT: control target
= control target key end

     0   :  { %s28_s0 = inlined_call_operand.vmem [shape: f32[8], index: 0, kind: input, shape index: {}]   ;;  %s29_s1 = inlined_call_operand.vmem [shape: f32[16,8], index: 1, kind: output, shape index: {}]  }
   0x1   :  { %v4_v0 = vld [vmem:[%s28_s0] ss:$0 sm:$0xff] }
   0x2   :  { %5 = vst [vmem:[%s29_s1] sm:$0xff] %v4_v0 }
   0x3   :  { %8 = vst [vmem:[%s29_s1 + $0x8] sm:$0xff] %v4_v0 }

// kernel: tile.34
= control target key start
LH: loop header
LB: loop body
LE: loop exit
PB: predicated region body
PF: predicated region fallthrough
CT: control target
= control target key end

     0   :  { %s131_s10 = smov 120   ;;  %s132_s11 = smov 104   ;;  %vm3_vm0 = vcmask 64512   ;;  %vm9_vm1 = vcmask 1048512   ;;  %vm15_vm2 = vcmask 982912   ;;  %vm21_vm3 = vcmask 917312   ;;  %s207_s0 = inlined_call_operand.vmem [shape: f32[16,8], index: 0, kind: input, shape index: {}]   ;;  %s208_s1 = inlined_call_operand.vmem [shape: f32[1,128], index: 1, kind: output, shape index: {}]  }
   0x1   :  { %v101_v0 = vld [vmem:[%s207_s0 + $0xf] sm:$0x1]   ;;  %v103_v1 = vld [vmem:[%s207_s0 + $0xd] sm:$0x1]   ;;  %v105_v2 = vld [vmem:[%s207_s0 + $0xb] sm:$0x1]  }
   0x2   :  { %7 = vrot.lane.b32.xlu0 %v101_v0, %s131_s10  ;;  %19 = vrot.lane.b32.xlu1 %v103_v1, %s132_s11  ;;  %s133_s14 = smov 88   ;;  %v102_v3 = vld [vmem:[%s207_s0 + $0xe] sm:$0x1]   ;;  %v104_v4 = vld [vmem:[%s207_s0 + $0xc] sm:$0x1]   ;;  %s134_s19 = smov 112  }
   0x3   :  { %31 = vrot.lane.b32.xlu2 %v105_v2, %s133_s14  ;;  %s135_s20 = smov 96   ;;  %v106_v5 = vld [vmem:[%s207_s0 + $0xa] sm:$0x1]   ;;  %s136_s23 = smov 80   ;;  %v107_v6 = vld [vmem:[%s207_s0 + $0x9] sm:$0x1]  }
   0x4   :  { %v108_v7 = vld [vmem:[%s207_s0 + $0x8] sm:$0x1]   ;;  %s137_s28 = smov 72   ;;  %s138_s29 = smov 64   ;;  %v109_v8 = vld [vmem:[%s207_s0 + $0x7] sm:$0x1]  }
   0x5   :  { %s139_s3 = smov 56   ;;  %v110_v9 = vld [vmem:[%s207_s0 + $0x6] sm:$0x1]   ;;  %v111_v10 = vld [vmem:[%s207_s0 + $0x5] sm:$0x1]   ;;  %s140_s8 = smov 48  }
   0x6   :  { %s141_s9 = smov 40   ;;  %v112_v11 = vld [vmem:[%s207_s0 + $0x4] sm:$0x1]   ;;  %s142_s12 = smov 32   ;;  %v113_v12 = vld [vmem:[%s207_s0 + $0x3] sm:$0x1]  }
   0x7   :  { %v114_v13 = vld [vmem:[%s207_s0 + $0x2] sm:$0x1]   ;;  %s143_s17 = smov 24   ;;  %s144_s18 = smov 16   ;;  %v115_v14 = vld [vmem:[%s207_s0 + $0x1] sm:$0x1]  }
   0x8   :  { %s145_s21 = smov 8   ;;  %v2_v15 = vld [vmem:[%s207_s0] sm:$0x1]   ;;  %vm27_vm4 = vcmask 851712   ;;  %vm33_vm5 = vcmask 786112   ;;  %vm39_vm6 = vcmask 720512  }
   0x9   :  { %4 = vst.msk [vmem:[#allocation0] sm:$0x1] %vm3_vm0, %v2_v15   ;;  %vm45_vm7 = vcmask 654912   ;;  %vm51_vm8 = vcmask 589312   ;;  %vm57_vm9 = vcmask 523712   ;;  %vm63_vm10 = vcmask 458112  }
   0xa   :  { %13 = vrot.lane.b32.xlu0 %v102_v3, %s134_s19  ;;  %25 = vrot.lane.b32.xlu1 %v104_v4, %s135_s20  ;;  %vm69_vm11 = vcmask 392512   ;;  %vm75_vm12 = vcmask 326912   ;;  %vm81_vm13 = vcmask 261312   ;;  %vm87_vm14 = vcmask 195712  }
   0xb   :  { %37 = vrot.lane.b32.xlu2 %v106_v5, %s136_s23  ;;  %vm93_vm15 = vcmask 130112  }
  0x12   :  { %43 = vrot.lane.b32.xlu0 %v107_v6, %s137_s28  ;;  %49 = vrot.lane.b32.xlu1 %v108_v7, %s138_s29 }
  0x13   :  { %55 = vrot.lane.b32.xlu2 %v109_v8, %s139_s3 }
  0x1a   :  { %61 = vrot.lane.b32.xlu0 %v110_v9, %s140_s8  ;;  %67 = vrot.lane.b32.xlu1 %v111_v10, %s141_s9 }
  0x1b   :  { %73 = vrot.lane.b32.xlu2 %v112_v11, %s142_s12 }
  0x22   :  { %79 = vrot.lane.b32.xlu0 %v113_v12, %s143_s17  ;;  %85 = vrot.lane.b32.xlu1 %v114_v13, %s144_s18 }
  0x23   :  { %91 = vrot.lane.b32.xlu2 %v115_v14, %s145_s21 }
  0x5d   :  { %v32_v16 = vpop.permute.xlu2 %31  }
  0x65   :  { %v38_v17 = vpop.permute.xlu2 %37  }
  0x6d   :  { %v56_v18 = vpop.permute.xlu2 %55  }
  0x74   :  { %v8_v19 = vpop.permute.xlu0 %7   ;;  %v20_v20 = vpop.permute.xlu1 %19  }
  0x75   :  { %10 = vst.msk [vmem:[#allocation0] sm:$0x1] %vm9_vm1, %v8_v19   ;;  %v74_v21 = vpop.permute.xlu2 %73  }
  0x7c   :  { %v14_v22 = vpop.permute.xlu0 %13   ;;  %v26_v23 = vpop.permute.xlu1 %25  }
  0x7d   :  { %16 = vst.msk [vmem:[#allocation0] sm:$0x1] %vm15_vm2, %v14_v22   ;;  %v92_v24 = vpop.permute.xlu2 %91  }
  0x7e   :  { %22 = vst.msk [vmem:[#allocation0] sm:$0x1] %vm21_vm3, %v20_v20  }
  0x7f   :  { %28 = vst.msk [vmem:[#allocation0] sm:$0x1] %vm27_vm4, %v26_v23  }
  0x80   :  { %34 = vst.msk [vmem:[#allocation0] sm:$0x1] %vm33_vm5, %v32_v16  }
  0x81   :  { %40 = vst.msk [vmem:[#allocation0] sm:$0x1] %vm39_vm6, %v38_v17  }
  0x84   :  { %v44_v25 = vpop.permute.xlu0 %43   ;;  %v50_v26 = vpop.permute.xlu1 %49  }
  0x85   :  { %46 = vst.msk [vmem:[#allocation0] sm:$0x1] %vm45_vm7, %v44_v25  }
  0x86   :  { %52 = vst.msk [vmem:[#allocation0] sm:$0x1] %vm51_vm8, %v50_v26  }
  0x87   :  { %58 = vst.msk [vmem:[#allocation0] sm:$0x1] %vm57_vm9, %v56_v18  }
  0x8c   :  { %v62_v27 = vpop.permute.xlu0 %61   ;;  %v68_v28 = vpop.permute.xlu1 %67  }
  0x8d   :  { %64 = vst.msk [vmem:[#allocation0] sm:$0x1] %vm63_vm10, %v62_v27  }
  0x8e   :  { %70 = vst.msk [vmem:[#allocation0] sm:$0x1] %vm69_vm11, %v68_v28  }
  0x8f   :  { %76 = vst.msk [vmem:[#allocation0] sm:$0x1] %vm75_vm12, %v74_v21  }
  0x94   :  { %v80_v29 = vpop.permute.xlu0 %79   ;;  %v86_v30 = vpop.permute.xlu1 %85  }
  0x95   :  { %82 = vst.msk [vmem:[#allocation0] sm:$0x1] %vm81_vm13, %v80_v29  }
  0x96   :  { %88 = vst.msk [vmem:[#allocation0] sm:$0x1] %vm87_vm14, %v86_v30  }
  0x97   :  { %94 = vst.msk [vmem:[#allocation0] sm:$0x1] %vm93_vm15, %v92_v24  }
  0x9e   :  { %v97_v31 = vld [vmem:[#allocation0] sm:$0x1] }
  0x9f   :  { %100 = vst [vmem:[%s208_s1] sm:$0x1] %v97_v31 }

// kernel: hffc_block.4
= control target key start
LH: loop header
LB: loop body
LE: loop exit
PB: predicated region body
PF: predicated region fallthrough
CT: control target
= control target key end

     0   :  { %s682_s15 = smov 0   ;;  %s905_s0 = inlined_call_operand.vmem [shape: f32[2,18,144], index: 0, kind: input, shape index: {}]   ;;  %s906_s1 = inlined_call_operand.vmem [shape: f32[3,144,128], index: 1, kind: input, shape index: {}]   ;;  %s907_s2 = inlined_call_operand.vmem [shape: f32[2,16,128], index: 2, kind: output, shape index: {0}]   ;;  %s908_s3 = inlined_call_operand.vmem [shape: f32[2,1,128], index: 3, kind: output, shape index: {1}]   ;;  %s909_s4 = inlined_call_operand.vmem [shape: f32[2,1,128], index: 4, kind: output, shape index: {2}]  }
   0x1 LB: > { %s587_s16 = sadd.s32 4294967295, %s655_s15   ;;  %p591_p0 = scmp.ge.s32.totalorder %s655_s15, 1  ;;  %s655_s15 = sphi %s682_s15, %s15_s15  }
   0x2   : > { %p167_p1 = scmp.lt.s32.totalorder %s655_s15, 3 }
   0x4   : > { %p168_p2 = pnand %p591_p0, %p167_p1 }
   0x5   : > { %p199_p3 = scmp.lt.s32.totalorder (!%p168_p2), %s587_s16, 1 }
   0x6   : > { %171 = sbr.rel (%p168_p2) target bundleno = 207 (0xcf), region = 28 }
   0xb   : > { %v610_v0 = vld [vmem:[%s906_s1 + $0x108] sm:$0xff]  ;;  %v236_v1 = vld [vmem:[%s906_s1 + $0x78] sm:$0xff]  ;;  %v609_v2 = vld [vmem:[%s906_s1 + $0x100] sm:$0xff]  ;;  %s911_s16 = smov (!%p199_p3, %s587_s16), 1  ;;  %vm277_vm0 = vcmask 130048   ;;  %vm264_vm1 = vcmask 1046528  }
   0xc   : > { %282 = vmatpush.msra.mxu0 %v610_v0  ;;  %332 = vmatpush.msra.mxu2 %v236_v1  ;;  %v235_v3 = vld [vmem:[%s906_s1 + $0x70] sm:$0xff]  ;;  %v608_v4 = vld [vmem:[%s906_s1 + $0xf8] sm:$0xff]  ;;  %v234_v5 = vld [vmem:[%s906_s1 + $0x68] sm:$0xff]  ;;  %s640_s11 = smul.u32 48, %s911_s16  ;;  %vm397_vm2 = vcmask 1045504   ;;  %s639_s9 = sshll.u32 %s911_s16, 4 }
   0xd   : > { %v612_v6 = vld [vmem:[%s906_s1 + $0x118] sm:$0xff]  ;;  %v611_v7 = vld [vmem:[%s906_s1 + $0x110] sm:$0xff]  ;;  %v233_v9 = vld [vmem:[%s906_s1 + $0x60] sm:$0xff]  ;;  %s208_s12 = scalar_lea.vmem %s907_s2, %s639_s9  ;;  %s211_s17 = scalar_lea.vmem %s908_s3, %s911_s16 }
   0xe   : > { %283 = vmatpush.msra.mxu0 %v609_v2  ;;  %333 = vmatpush.msra.mxu2 %v235_v3  ;;  %v607_v8 = vld [vmem:[%s906_s1 + $0xf0] sm:$0xff]  ;;  %v632_v10 = vld [vmem:[%s906_s1 + $0x198] sm:$0xff]  ;;  %v606_v11 = vld [vmem:[%s906_s1 + $0xe8] sm:$0xff]  ;;  %s735_s22 = scalar_lea.vmem %s905_s0, %s640_s11  ;;  %s214_s20 = scalar_lea.vmem %s909_s4, %s911_s16 }
   0xf   : > { %319 = vmatpush.msra.mxu1 %v612_v6  ;;  %v232_v12 = vld [vmem:[%s906_s1 + $0x58] sm:$0xff]  ;;  %v631_v13 = vld [vmem:[%s906_s1 + $0x190] sm:$0xff]  ;;  %v238_v14 = vld [vmem:[%s906_s1 + $0x88] sm:$0xff] }
  0x10   : > { %284 = vmatpush.msra.mxu0 %v608_v4  ;;  %334 = vmatpush.msra.mxu2 %v234_v5  ;;  %v605_v15 = vld [vmem:[%s906_s1 + $0xe0] sm:$0xff]  ;;  %v231_v16 = vld [vmem:[%s906_s1 + $0x50] sm:$0xff]  ;;  %v630_v18 = vld [vmem:[%s906_s1 + $0x188] sm:$0xff] }
  0x11   : > { %320 = vmatpush.msra.mxu1 %v611_v7  ;;  %369 = vmatpush.msra.mxu3 %v238_v14  ;;  %v237_v17 = vld [vmem:[%s906_s1 + $0x80] sm:$0xff]  ;;  %v756_v19 = vld [vmem:[%s735_s22 + $0x8] sm:$0xff]  ;;  %v604_v20 = vld [vmem:[%s906_s1 + $0xd8] sm:$0xff] }
  0x12   : > { %285 = vmatpush.msra.mxu0 %v607_v8  ;;  %335 = vmatpush.msra.mxu2 %v233_v9  ;;  %v230_v21 = vld [vmem:[%s906_s1 + $0x48] sm:$0xff]  ;;  %v629_v22 = vld [vmem:[%s906_s1 + $0x180] sm:$0xff]  ;;  %v603_v24 = vld [vmem:[%s906_s1 + $0xd0] sm:$0xff]  ;;  %v268_v34 = vrot.slane %v756_v19, 1  ;;  %v401_v42 = vrot.slane %v756_v19, 2 }
  0x13   : > { %414 = vmatpush.msrb.mxu1 %v632_v10  ;;  %370 = vmatpush.msra.mxu3 %v237_v17  ;;  %v634_v23 = vld [vmem:[%s906_s1 + $0x1a8] sm:$0xff]  ;;  %v229_v25 = vld [vmem:[%s906_s1 + $0x40] sm:$0xff]  ;;  %v628_v27 = vld [vmem:[%s906_s1 + $0x178] sm:$0xff] }
  0x14   : > { %286 = vmatpush.msra.mxu0 %v606_v11  ;;  %336 = vmatpush.msra.mxu2 %v232_v12  ;;  %v602_v26 = vld [vmem:[%s906_s1 + $0xc8] sm:$0xff]  ;;  %v228_v28 = vld [vmem:[%s906_s1 + $0x38] sm:$0xff]  ;;  %v633_v30 = vld [vmem:[%s906_s1 + $0x1a0] sm:$0xff] }
  0x15   : > { %415 = vmatpush.msrb.mxu1 %v631_v13  ;;  %615 = vmatmul.msk.f32.vlgmr.msra.gmra.mxu3 %vm277_vm0, %v756_v19  ;;  %v788_v29 = vld [vmem:[%s735_s22 + $0x18] sm:$0xff]  ;;  %v627_v31 = vld [vmem:[%s906_s1 + $0x170] sm:$0xff]  ;;  %v601_v32 = vld [vmem:[%s906_s1 + $0xc0] sm:$0xff] }
  0x16   : > { %287 = vmatpush.msra.mxu0 %v605_v15  ;;  %337 = vmatpush.msra.mxu2 %v231_v16  ;;  %v227_v33 = vld [vmem:[%s906_s1 + $0x30] sm:$0xff]  ;;  %v626_v35 = vld [vmem:[%s906_s1 + $0x168] sm:$0xff]  ;;  %v269_v36 = vrot.slane %v788_v29, 1  ;;  %v600_v37 = vld [vmem:[%s906_s1 + $0xb8] sm:$0xff]  ;;  %v402_v45 = vrot.slane %v788_v29, 2 }
  0x17   : > { %416 = vmatpush.msrb.mxu1 %v630_v18  ;;  %451 = vmatpush.msrb.mxu3 %v634_v23  ;;  %v226_v38 = vld [vmem:[%s906_s1 + $0x28] sm:$0xff]  ;;  %v625_v39 = vld [vmem:[%s906_s1 + $0x160] sm:$0xff]  ;;  %v599_v40 = vld [vmem:[%s906_s1 + $0xb0] sm:$0xff] }
  0x18   : > { %288 = vmatpush.msra.mxu0 %v604_v20  ;;  %338 = vmatpush.msra.mxu2 %v230_v21  ;;  %v225_v41 = vld [vmem:[%s906_s1 + $0x20] sm:$0xff]  ;;  %v270_v43 = vsel %vm264_vm1, %v268_v34, %v269_v36  ;;  %v598_v44 = vld [vmem:[%s906_s1 + $0xa8] sm:$0xff]  ;;  %v224_v46 = vld [vmem:[%s906_s1 + $0x18] sm:$0xff]  ;;  %v403_v56 = vsel %vm397_vm2, %v401_v42, %v402_v45 }
  0x19   : > { %417 = vmatpush.msrb.mxu1 %v629_v22  ;;  %452 = vmatpush.msrb.mxu3 %v633_v30  ;;  %v215_v47 = vld [vmem:[%s735_s22] sm:$0xff]  ;;  %v217_v48 = vld [vmem:[%s735_s22 + $0x10] sm:$0xff]  ;;  %v624_v49 = vld [vmem:[%s906_s1 + $0x158] sm:$0xff] }
  0x1a   : > { %289 = vmatpush.msra.mxu0 %v603_v24  ;;  %339 = vmatpush.msra.mxu2 %v229_v25  ;;  %v220_v50 = vld [vmem:[%s735_s22 + $0x28] sm:$0x3]  ;;  %v597_v51 = vld [vmem:[%s906_s1 + $0xa0] sm:$0xff]  ;;  %v223_v52 = vld [vmem:[%s906_s1 + $0x10] sm:$0xff]  ;;  %v265_v54 = vrot.slane %v215_v47, 1  ;;  %v266_v55 = vrot.slane %v217_v48, 1 }
  0x1b   : > { %418 = vmatpush.msrb.mxu1 %v628_v27  ;;  %v623_v53 = vld [vmem:[%s906_s1 + $0x150] sm:$0xff]  ;;  %v596_v57 = vld [vmem:[%s906_s1 + $0x98] sm:$0xff]  ;;  %v222_v58 = vld [vmem:[%s906_s1 + $0x8] sm:$0xff]  ;;  %v273_v59 = vrot.slane %v220_v50, 1  ;;  %v406_v1 = vrot.slane %v220_v50, 2  ;;  %v398_v8 = vrot.slane %v215_v47, 2 }
  0x1c   : > { %290 = vmatpush.msra.mxu0 %v602_v26  ;;  %340 = vmatpush.msra.mxu2 %v228_v28  ;;  %v622_v60 = vld [vmem:[%s906_s1 + $0x148] sm:$0xff]  ;;  %v595_v61 = vld [vmem:[%s906_s1 + $0x90] sm:$0xff]  ;;  %v221_v62 = vld [vmem:[%s906_s1] sm:$0xff]  ;;  %v267_v0 = vsel %vm264_vm1, %v265_v54, %v266_v55  ;;  %v399_v9 = vrot.slane %v217_v48, 2 }
  0x1d   : > { %419 = vmatpush.msrb.mxu1 %v627_v31  ;;  %616 = vmatmul.msk.f32.gmra.mxu3 %vm277_vm0, %v788_v29  ;;  %v621_v63 = vld [vmem:[%s906_s1 + $0x140] sm:$0xff]  ;;  %v274_v2 = vsel %vm264_vm1, %v269_v36, %v273_v59  ;;  %v620_v4 = vld [vmem:[%s906_s1 + $0x138] sm:$0xff]  ;;  %v619_v5 = vld [vmem:[%s906_s1 + $0x130] sm:$0xff]  ;;  %v407_v7 = vsel %vm397_vm2, %v402_v45, %v406_v1 }
  0x1e   : > { %291 = vmatpush.msra.mxu0 %v601_v32  ;;  %341 = vmatpush.msra.mxu2 %v227_v33  ;;  %v219_v3 = vld [vmem:[%s735_s22 + $0x20] sm:$0x3]  ;;  %v618_v10 = vld [vmem:[%s906_s1 + $0x128] sm:$0xff]  ;;  %v400_v13 = vsel %vm397_vm2, %v398_v8, %v399_v9 }
  0x1f   : > { %420 = vmatpush.msrb.mxu1 %v626_v35  ;;  %v271_v6 = vrot.slane %v219_v3, 1  ;;  %v617_v11 = vld [vmem:[%s906_s1 + $0x120] sm:$0xff]  ;;  %v404_v14 = vrot.slane %v219_v3, 2 }
  0x20   : > { %292 = vmatpush.msra.mxu0 %v600_v37  ;;  %342 = vmatpush.msra.mxu2 %v226_v38 }
  0x21   : > { %421 = vmatpush.msrb.mxu1 %v625_v39  ;;  %v272_v12 = vsel %vm264_vm1, %v266_v55, %v271_v6  ;;  %v405_v15 = vsel %vm397_vm2, %v399_v9, %v404_v14 }
  0x22   : > { %293 = vmatpush.msra.mxu0 %v599_v40  ;;  %343 = vmatpush.msra.mxu2 %v225_v41 }
  0x23   : > { %613 = vmatmul.msk.f32.vlgmr.msra.gmra.mxu1 %vm277_vm0, %v270_v43 }
  0x24   : > { %294 = vmatpush.msra.mxu0 %v598_v44  ;;  %344 = vmatpush.msra.mxu2 %v224_v46 }
  0x25   : > { %422 = vmatpush.msrb.mxu1 %v624_v49  ;;  %635 = vmatmul.msk.f32.vlgmr.msrb.gmra.mxu3 %vm277_vm0, %v403_v56 }
  0x26   : > { %295 = vmatpush.msra.mxu0 %v597_v51  ;;  %345 = vmatpush.msra.mxu2 %v223_v52 }
  0x27   : > { %423 = vmatpush.msrb.mxu1 %v623_v53 }
  0x28   : > { %296 = vmatpush.msra.mxu0 %v596_v57  ;;  %346 = vmatpush.msra.mxu2 %v222_v58 }
  0x29   : > { %424 = vmatpush.msrb.mxu1 %v622_v60 }
  0x2a   : > { %297 = vmatpush.msra.mxu0 %v595_v61  ;;  %347 = vmatpush.msra.mxu2 %v221_v62 }
  0x2b   : > { %425 = vmatpush.msrb.mxu1 %v621_v63  ;;  %298 = vmatmul.f32.vlgmr.msra.gmra.mxu0 %v267_v0 }
  0x2c   : > { %614 = vmatmul.msk.f32.gmra.mxu1 %vm277_vm0, %v274_v2  ;;  %348 = vmatmul.f32.vlgmr.msra.gmra.mxu2 %v215_v47 }
  0x2d   : > { %426 = vmatpush.msrb.mxu1 %v620_v4  ;;  %636 = vmatmul.msk.f32.gmra.mxu3 %vm277_vm0, %v407_v7 }
  0x2f   : > { %427 = vmatpush.msrb.mxu1 %v619_v5 }
  0x31   : > { %428 = vmatpush.msrb.mxu1 %v618_v10 }
  0x33   : > { %429 = vmatpush.msrb.mxu1 %v617_v11  ;;  %301 = vmatmul.f32.gmra.mxu0 %v272_v12 }
  0x34   : > { %351 = vmatmul.f32.gmra.mxu2 %v217_v48  ;;  %430 = vmatmul.f32.vlgmr.msrb.gmra.mxu1 %v400_v13 }
  0x3c   : > { %433 = vmatmul.f32.gmra.mxu1 %v405_v15 }
  0x98   : > { %v372_v16 = vpop.f32.mrf.mxu3 }
  0xa0   : > { %v322_v17 = vpop.f32.mrf.mxu1  ;;  %v375_v18 = vpop.f32.mrf.mxu3 }
  0xa8   : > { %v299_v19 = vpop.f32.mrf.mxu0  ;;  %v454_v21 = vpop.f32.mrf.mxu3 }
  0xa9   : > { %v325_v20 = vpop.f32.mrf.mxu1  ;;  %v323_v22 = vadd.f32 %v322_v17, %v299_v19 }
  0xaf   : > { %v349_v23 = vpop.f32.mrf.mxu2 }
  0xb0   : > { %v350_v24 = vadd.f32 %v349_v23, %v323_v22  ;;  %v302_v28 = vpop.f32.mrf.mxu0  ;;  %v457_v32 = vpop.f32.mrf.mxu3 }
  0xb1   : > { %v431_v25 = vpop.f32.mrf.mxu1  ;;  %v326_v30 = vadd.f32 %v325_v20, %v302_v28 }
  0xb2   : > { %v373_v26 = vadd.f32 %v372_v16, %v350_v24  ;;  %v455_v27 = vadd.f32 %v454_v21, %v431_v25 }
  0xb4   : > { %v460_v29 = vadd.f32 %v455_v27, %v373_v26 }
  0xb6   : > { %462 = vst [vmem:[%s208_s12] sm:$0xff] %v460_v29  ;;  %v472_v38 = vmul.f32 %v460_v29, %v460_v29 }
  0xb7   : > { %v352_v31 = vpop.f32.mrf.mxu2 }
  0xb8   : > { %v353_v33 = vadd.f32 %v352_v31, %v326_v30 }
  0xb9   : > { %v434_v34 = vpop.f32.mrf.mxu1 }
  0xba   : > { %v376_v35 = vadd.f32 %v375_v18, %v353_v33  ;;  %v458_v36 = vadd.f32 %v457_v32, %v434_v34 }
  0xbc   : > { %v461_v37 = vadd.f32 %v458_v36, %v376_v35 }
  0xbe   : > { %463 = vst [vmem:[%s208_s12 + $0x8] sm:$0xff] %v461_v37  ;;  %v464_v39 = vadd.f32 %v461_v37, %v460_v29  ;;  %v473_v40 = vmul.f32 %v461_v37, %v461_v37 }
  0xc0   : > { %v465_v41 = vrot.slane %v464_v39, 4  ;;  %v474_v42 = vadd.f32 %v473_v40, %v472_v38 }
  0xc2   : > { %v466_v43 = vadd.f32 %v465_v41, %v464_v39  ;;  %v475_v44 = vrot.slane %v474_v42, 4 }
  0xc4   : > { %v467_v45 = vrot.slane %v466_v43, 2  ;;  %v476_v46 = vadd.f32 %v475_v44, %v474_v42 }
  0xc6   : > { %v468_v47 = vadd.f32 %v467_v45, %v466_v43  ;;  %v477_v48 = vrot.slane %v476_v46, 2 }
  0xc8   : > { %v469_v49 = vrot.slane %v468_v47, 1  ;;  %v478_v50 = vadd.f32 %v477_v48, %v476_v46 }
  0xca   : > { %v470_v51 = vadd.f32 %v469_v49, %v468_v47  ;;  %v479_v52 = vrot.slane %v478_v50, 1 }
  0xcc   : > { %471 = vst [vmem:[%s211_s17] sm:$0x1] %v470_v51  ;;  %v480_v53 = vadd.f32 %v479_v52, %v478_v50 }
  0xce   : > { %481 = vst [vmem:[%s214_s20] sm:$0x1] %v480_v53 }
  0xcf PF: > { %s15_s15 = sadd.s32 1, %s655_s15  }
  0xd0   : > { %p12_p4 = scmp.ge.s32.totalorder %s15_s15, 4  }
  0xd2   :  { %14 = sbr.rel (!%p12_p4) target bundleno = 1 (0x1), region = 84 }

// kernel: tile.43
= control target key start
LH: loop header
LB: loop body
LE: loop exit
PB: predicated region body
PF: predicated region fallthrough
CT: control target
= control target key end

     0   :  { %s34_s0 = inlined_call_operand.vmem [shape: f32[16], index: 0, kind: input, shape index: {}]   ;;  %s35_s1 = inlined_call_operand.vmem [shape: f32[18,16], index: 1, kind: output, shape index: {}]  }
   0x1   :  { %v4_v0 = vld [vmem:[%s34_s0] ss:$0 sm:$0xff] }
   0x2   :  { %5 = vst [vmem:[%s35_s1] sm:$0xff] %v4_v0 }
   0x3   :  { %10 = vst [vmem:[%s35_s1 + $0x8] sm:$0xff] %v4_v0 }
   0x4   :  { %11 = vst [vmem:[%s35_s1 + $0x10] sm:$0xff] %v4_v0 }

// kernel: tile.44
= control target key start
LH: loop header
LB: loop body
LE: loop exit
PB: predicated region body
PF: predicated region fallthrough
CT: control target
= control target key end

     0   :  { %s6_s6 = smov 3  ;;  %s20_s9 = smov 3  ;;  %vm3_vm0 = vcmask 130048   ;;  %vm10_vm1 = vcmask 1048448   ;;  %vm17_vm2 = vcmask 917248   ;;  %vm24_vm3 = vcmask 786048   ;;  %s137_s0 = inlined_call_operand.vmem [shape: f32[18,16], index: 0, kind: input, shape index: {}]   ;;  %s138_s1 = inlined_call_operand.vmem [shape: f32[1,288], index: 1, kind: output, shape index: {}]  }
   0x1   :  { %v71_v0 = vld [vmem:[%s137_s0 + $0x7] ss:$8 sm:%s6_s6]   ;;  %s87_s10 = smov 112   ;;  %v73_v1 = vld [vmem:[%s137_s0 + $0x5] ss:$8 sm:%s20_s9]   ;;  %s88_s13 = smov 80  }
   0x2   :  { %8 = vrot.lane.b32.xlu0 %v71_v0, %s87_s10  ;;  %22 = vrot.lane.b32.xlu1 %v73_v1, %s88_s13  ;;  %s13_s14 = smov 3  ;;  %s34_s15 = smov 3  ;;  %v77_v6 = vld [vmem:[%s137_s0 + $0x1] ss:$8 sm:$0x7]   ;;  %vm31_vm4 = vcmask 654848  }
   0x3   :  { %s27_s16 = smov 3  ;;  %v75_v2 = vld [vmem:[%s137_s0 + $0x3] ss:$8 sm:%s34_s15]   ;;  %s89_s19 = smov 48   ;;  %v72_v3 = vld [vmem:[%s137_s0 + $0x6] ss:$8 sm:%s13_s14]  }
   0x4   :  { %36 = vrot.lane.b32.xlu2 %v75_v2, %s89_s19  ;;  %v74_v4 = vld [vmem:[%s137_s0 + $0x4] ss:$8 sm:%s27_s16]   ;;  %s41_s24 = smov 3  ;;  %s90_s25 = smov 96   ;;  %vm38_vm5 = vcmask 523648   ;;  %vm45_vm6 = vcmask 392448  }
   0x5   :  { %s91_s26 = smov 64   ;;  %v76_v5 = vld [vmem:[%s137_s0 + $0x2] ss:$8 sm:%s41_s24]   ;;  %s92_s29 = smov 32   ;;  %vm51_vm7 = vcmask 261248  }
   0x6   :  { %s93_s3 = smov 16   ;;  %v2_v7 = vld [vmem:[%s137_s0] ss:$8 sm:$0x7]  }
   0x7   :  { %4 = vst.msk [vmem:[#allocation0] ss:$8 sm:$0x7] %vm3_vm0, %v2_v7  }
   0xa   :  { %15 = vrot.lane.b32.xlu0 %v72_v3, %s90_s25  ;;  %29 = vrot.lane.b32.xlu1 %v74_v4, %s91_s26 }
   0xc   :  { %43 = vrot.lane.b32.xlu2 %v76_v5, %s92_s29 }
  0x12   :  { %49 = vrot.lane.b32.xlu0 %v77_v6, %s93_s3 }
  0x5e   :  { %v37_v8 = vpop.permute.xlu2 %36  }
  0x66   :  { %v44_v9 = vpop.permute.xlu2 %43  }
  0x74   :  { %v9_v10 = vpop.permute.xlu0 %8   ;;  %v23_v11 = vpop.permute.xlu1 %22  }
  0x75   :  { %11 = vst.msk [vmem:[#allocation0] ss:$8 sm:$0x3] %vm10_vm1, %v9_v10  }
  0x7c   :  { %v16_v12 = vpop.permute.xlu0 %15   ;;  %v30_v13 = vpop.permute.xlu1 %29  }
  0x7d   :  { %18 = vst.msk [vmem:[#allocation0] ss:$8 sm:$0x3] %vm17_vm2, %v16_v12  }
  0x7e   :  { %25 = vst.msk [vmem:[#allocation0] ss:$8 sm:$0x3] %vm24_vm3, %v23_v11  }
  0x7f   :  { %32 = vst.msk [vmem:[#allocation0] ss:$8 sm:$0x3] %vm31_vm4, %v30_v13  }
  0x80   :  { %39 = vst.msk [vmem:[#allocation0] ss:$8 sm:$0x3] %vm38_vm5, %v37_v8  }
  0x81   :  { %46 = vst.msk [vmem:[#allocation0] ss:$8 sm:$0x3] %vm45_vm6, %v44_v9  }
  0x84   :  { %v50_v14 = vpop.permute.xlu0 %49  }
  0x85   :  { %52 = vst.msk [vmem:[#allocation0] ss:$8 sm:$0x7] %vm51_vm7, %v50_v14  }
  0x8c   :  { %v55_v15 = vld [vmem:[#allocation0] sm:$0x1]  ;;  %v60_v16 = vld [vmem:[#allocation0 + $0x8] sm:$0x1]  ;;  %v66_v17 = vld [vmem:[#allocation0 + $0x10] sm:$0x1] }
  0x8d   :  { %58 = vst [vmem:[%s138_s1] sm:$0x1] %v55_v15 }
  0x8e   :  { %78 = vst [vmem:[%s138_s1 + $0x1] sm:$0x1] %v60_v16 }
  0x8f   :  { %79 = vst [vmem:[%s138_s1 + $0x2] sm:$0x1] %v66_v17 }

// kernel: hffc_block.5
= control target key start
LH: loop header
LB: loop body
LE: loop exit
PB: predicated region body
PF: predicated region fallthrough
CT: control target
= control target key end

     0   :  { %vm171_vm4 = vcmask 1040384   ;;  %s436_s3 = inlined_call_operand.vmem [shape: f32[128,256], index: 3, kind: input, shape index: {}]   ;;  %s437_s1 = inlined_call_operand.vmem [shape: f32[1,128], index: 1, kind: input, shape index: {}]   ;;  %s438_s2 = inlined_call_operand.vmem [shape: f32[1,128], index: 2, kind: input, shape index: {}]   ;;  %s439_s0 = inlined_call_operand.vmem [shape: f32[32,128], index: 0, kind: input, shape index: {}]   ;;  %s440_s4 = inlined_call_operand.vmem [shape: f32[32,256], index: 4, kind: output, shape index: {0}]   ;;  %s441_s5 = inlined_call_operand.vmem [shape: f32[1,1,256], index: 5, kind: output, shape index: {1}]   ;;  %s442_s6 = inlined_call_operand.vmem [shape: f32[1,1,256], index: 6, kind: output, shape index: {2}]  }
   0x1   :  { %v82_v0 = vld [vmem:[%s436_s3 + $0xf0] sm:$0xff]  ;;  %v83_v1 = vld [vmem:[%s436_s3 + $0xf8] sm:$0xff]  ;;  %v80_v2 = vld [vmem:[%s436_s3 + $0xe0] sm:$0xff] }
   0x2   :  { %84 = vmatpush.msra.mxu0 %v82_v0  ;;  %223 = vmatpush.msra.mxu2 %v82_v0  ;;  %v81_v3 = vld [vmem:[%s436_s3 + $0xe8] sm:$0xff]  ;;  %v78_v4 = vld [vmem:[%s436_s3 + $0xd0] sm:$0xff]  ;;  %v79_v5 = vld [vmem:[%s436_s3 + $0xd8] sm:$0xff] }
   0x3   :  { %113 = vmatpush.msra.mxu1 %v83_v1  ;;  %239 = vmatpush.msra.mxu3 %v83_v1  ;;  %v76_v6 = vld [vmem:[%s436_s3 + $0xc0] sm:$0xff]  ;;  %v77_v7 = vld [vmem:[%s436_s3 + $0xc8] sm:$0xff]  ;;  %v74_v8 = vld [vmem:[%s436_s3 + $0xb0] sm:$0xff] }
   0x4   :  { %85 = vmatpush.msra.mxu0 %v80_v2  ;;  %224 = vmatpush.msra.mxu2 %v80_v2  ;;  %v75_v9 = vld [vmem:[%s436_s3 + $0xb8] sm:$0xff]  ;;  %v72_v10 = vld [vmem:[%s436_s3 + $0xa0] sm:$0xff]  ;;  %v73_v11 = vld [vmem:[%s436_s3 + $0xa8] sm:$0xff] }
   0x5   :  { %114 = vmatpush.msra.mxu1 %v81_v3  ;;  %240 = vmatpush.msra.mxu3 %v81_v3  ;;  %v70_v12 = vld [vmem:[%s436_s3 + $0x90] sm:$0xff]  ;;  %v71_v13 = vld [vmem:[%s436_s3 + $0x98] sm:$0xff]  ;;  %v68_v14 = vld [vmem:[%s436_s3 + $0x80] sm:$0xff] }
   0x6   :  { %86 = vmatpush.msra.mxu0 %v78_v4  ;;  %225 = vmatpush.msra.mxu2 %v78_v4  ;;  %v69_v15 = vld [vmem:[%s436_s3 + $0x88] sm:$0xff]  ;;  %v66_v16 = vld [vmem:[%s436_s3 + $0x70] sm:$0xff]  ;;  %v255_v17 = vld [vmem:[%s437_s1] ss:$0 sm:$0xff] }
   0x7   :  { %115 = vmatpush.msra.mxu1 %v79_v5  ;;  %241 = vmatpush.msra.mxu3 %v79_v5  ;;  %v67_v18 = vld [vmem:[%s436_s3 + $0x78] sm:$0xff]  ;;  %v20_v19 = vld [vmem:[%s439_s0] sm:$0xff]  ;;  %v22_v20 = vld [vmem:[%s439_s0 + $0x10] sm:$0xff] }
   0x8   :  { %87 = vmatpush.msra.mxu0 %v76_v6  ;;  %226 = vmatpush.msra.mxu2 %v76_v6  ;;  %v64_v21 = vld [vmem:[%s436_s3 + $0x60] sm:$0xff]  ;;  %v65_v22 = vld [vmem:[%s436_s3 + $0x68] sm:$0xff]  ;;  %v62_v23 = vld [vmem:[%s436_s3 + $0x50] sm:$0xff]  ;;  %v28_v24 = vmul.f32 %v255_v17, %v20_v19  ;;  %v30_v26 = vmul.f32 %v255_v17, %v22_v20 }
   0x9   :  { %116 = vmatpush.msra.mxu1 %v77_v7  ;;  %242 = vmatpush.msra.mxu3 %v77_v7  ;;  %v256_v25 = vld [vmem:[%s438_s2] ss:$0 sm:$0xff]  ;;  %v63_v27 = vld [vmem:[%s436_s3 + $0x58] sm:$0xff]  ;;  %v61_v29 = vld [vmem:[%s436_s3 + $0x48] sm:$0xff] }
   0xa   :  { %88 = vmatpush.msra.mxu0 %v74_v8  ;;  %227 = vmatpush.msra.mxu2 %v74_v8  ;;  %v60_v28 = vld [vmem:[%s436_s3 + $0x40] sm:$0xff]  ;;  %v58_v30 = vld [vmem:[%s436_s3 + $0x30] sm:$0xff]  ;;  %v36_v31 = vadd.f32 %v256_v25, %v28_v24  ;;  %v38_v32 = vadd.f32 %v256_v25, %v30_v26  ;;  %v21_v33 = vld [vmem:[%s439_s0 + $0x8] sm:$0xff] }
   0xb   :  { %117 = vmatpush.msra.mxu1 %v75_v9  ;;  %243 = vmatpush.msra.mxu3 %v75_v9  ;;  %v59_v34 = vld [vmem:[%s436_s3 + $0x38] sm:$0xff]  ;;  %v56_v36 = vld [vmem:[%s436_s3 + $0x20] sm:$0xff]  ;;  %v57_v37 = vld [vmem:[%s436_s3 + $0x28] sm:$0xff]  ;;  %v29_v38 = vmul.f32 %v255_v17, %v21_v33 }
   0xc   :  { %89 = vmatpush.msra.mxu0 %v72_v10  ;;  %228 = vmatpush.msra.mxu2 %v72_v10  ;;  %v23_v35 = vld [vmem:[%s439_s0 + $0x18] sm:$0xff]  ;;  %v54_v39 = vld [vmem:[%s436_s3 + $0x10] sm:$0xff]  ;;  %v44_v40 = vmul.f32 0.01, %v36_v31  ;;  %v46_v41 = vmul.f32 0.01, %v38_v32 }
   0xd   :  { %118 = vmatpush.msra.mxu1 %v73_v11  ;;  %244 = vmatpush.msra.mxu3 %v73_v11  ;;  %v31_v42 = vmul.f32 %v255_v17, %v23_v35  ;;  %v55_v43 = vld [vmem:[%s436_s3 + $0x18] sm:$0xff]  ;;  %vm40_vm0 = vcmp.ge.f32.partialorder %v36_v31, 0.0  ;;  %vm42_vm1 = vcmp.ge.f32.partialorder %v38_v32, 0.0  ;;  %v52_v44 = vld [vmem:[%s436_s3] sm:$0xff]  ;;  %v53_v45 = vld [vmem:[%s436_s3 + $0x8] sm:$0xff]  ;;  %v37_v46 = vadd.f32 %v256_v25, %v29_v38 }
   0xe   :  { %90 = vmatpush.msra.mxu0 %v70_v12  ;;  %229 = vmatpush.msra.mxu2 %v70_v12  ;;  %v48_v47 = vsel %vm40_vm0, %v36_v31, %v44_v40  ;;  %v50_v48 = vsel %vm42_vm1, %v38_v32, %v46_v41  ;;  %v174_v35 = vlaneseq }
   0xf   :  { %119 = vmatpush.msra.mxu1 %v71_v13  ;;  %245 = vmatpush.msra.mxu3 %v71_v13  ;;  %v39_v49 = vadd.f32 %v256_v25, %v31_v42  ;;  %v45_v50 = vmul.f32 0.01, %v37_v46  ;;  %vm41_vm2 = vcmp.ge.f32.partialorder %v37_v46, 0.0 }
  0x10   :  { %91 = vmatpush.msra.mxu0 %v68_v14  ;;  %230 = vmatpush.msra.mxu2 %v68_v14  ;;  %vm176_vm5 = vcmp.lt.s32.totalorder %v174_v35, 256 }
  0x11   :  { %120 = vmatpush.msra.mxu1 %v69_v15  ;;  %246 = vmatpush.msra.mxu3 %v69_v15  ;;  %v47_v51 = vmul.f32 0.01, %v39_v49  ;;  %vm43_vm3 = vcmp.ge.f32.partialorder %v39_v49, 0.0  ;;  %v49_v52 = vsel %vm41_vm2, %v37_v46, %v45_v50 }
  0x12   :  { %92 = vmatpush.msra.mxu0 %v66_v16  ;;  %231 = vmatpush.msra.mxu2 %v66_v16 }
  0x13   :  { %121 = vmatpush.msra.mxu1 %v67_v18  ;;  %247 = vmatpush.msra.mxu3 %v67_v18  ;;  %v51_v53 = vsel %vm43_vm3, %v39_v49, %v47_v51 }
  0x14   :  { %93 = vmatpush.msra.mxu0 %v64_v21  ;;  %232 = vmatpush.msra.mxu2 %v64_v21 }
  0x15   :  { %122 = vmatpush.msra.mxu1 %v65_v22  ;;  %248 = vmatpush.msra.mxu3 %v65_v22 }
  0x16   :  { %94 = vmatpush.msra.mxu0 %v62_v23  ;;  %233 = vmatpush.msra.mxu2 %v62_v23 }
  0x17   :  { %123 = vmatpush.msra.mxu1 %v63_v27  ;;  %249 = vmatpush.msra.mxu3 %v63_v27 }
  0x18   :  { %95 = vmatpush.msra.mxu0 %v60_v28  ;;  %234 = vmatpush.msra.mxu2 %v60_v28 }
  0x19   :  { %124 = vmatpush.msra.mxu1 %v61_v29  ;;  %250 = vmatpush.msra.mxu3 %v61_v29 }
  0x1a   :  { %96 = vmatpush.msra.mxu0 %v58_v30  ;;  %235 = vmatpush.msra.mxu2 %v58_v30 }
  0x1b   :  { %125 = vmatpush.msra.mxu1 %v59_v34  ;;  %251 = vmatpush.msra.mxu3 %v59_v34 }
  0x1c   :  { %97 = vmatpush.msra.mxu0 %v56_v36  ;;  %236 = vmatpush.msra.mxu2 %v56_v36 }
  0x1d   :  { %126 = vmatpush.msra.mxu1 %v57_v37  ;;  %252 = vmatpush.msra.mxu3 %v57_v37 }
  0x1e   :  { %98 = vmatpush.msra.mxu0 %v54_v39  ;;  %237 = vmatpush.msra.mxu2 %v54_v39 }
  0x1f   :  { %127 = vmatpush.msra.mxu1 %v55_v43  ;;  %253 = vmatpush.msra.mxu3 %v55_v43 }
  0x20   :  { %99 = vmatpush.msra.mxu0 %v52_v44  ;;  %238 = vmatpush.msra.mxu2 %v52_v44 }
  0x21   :  { %128 = vmatpush.msra.mxu1 %v53_v45  ;;  %254 = vmatpush.msra.mxu3 %v53_v45 }
  0x22   :  { %100 = vmatmul.f32.vlgmr.msra.gmra.mxu0 %v48_v47  ;;  %106 = vmatmul.f32.vlgmr.msra.gmra.mxu2 %v50_v48 }
  0x23   :  { %129 = vmatmul.f32.vlgmr.msra.gmra.mxu1 %v48_v47  ;;  %135 = vmatmul.f32.vlgmr.msra.gmra.mxu3 %v50_v48 }
  0x2a   :  { %103 = vmatmul.f32.gmra.mxu0 %v49_v52  ;;  %109 = vmatmul.f32.gmra.mxu2 %v51_v53 }
  0x2b   :  { %132 = vmatmul.f32.gmra.mxu1 %v49_v52  ;;  %138 = vmatmul.f32.gmra.mxu3 %v51_v53 }
  0x9f   :  { %v101_v54 = vpop.f32.mrf.mxu0 }
  0xa0   :  { %142 = vst [vmem:[%s440_s4] sm:$0xff] %v101_v54  ;;  %v130_v55 = vpop.f32.mrf.mxu1  ;;  %v179_v59 = vmul.f32 %v101_v54, %v101_v54 }
  0xa1   :  { %143 = vst [vmem:[%s440_s4 + $0x8] sm:$0xff] %v130_v55  ;;  %v180_v63 = vmul.f32 %v130_v55, %v130_v55 }
  0xa5   :  { %v107_v56 = vpop.f32.mrf.mxu2 }
  0xa6   :  { %146 = vst [vmem:[%s440_s4 + $0x20] sm:$0xff] %v107_v56  ;;  %v136_v57 = vpop.f32.mrf.mxu3  ;;  %v183_v4 = vmul.f32 %v107_v56, %v107_v56 }
  0xa7   :  { %147 = vst [vmem:[%s440_s4 + $0x28] sm:$0xff] %v136_v57  ;;  %v104_v58 = vpop.f32.mrf.mxu0  ;;  %v184_v6 = vmul.f32 %v136_v57, %v136_v57 }
  0xa8   :  { %144 = vst [vmem:[%s440_s4 + $0x10] sm:$0xff] %v104_v58  ;;  %v150_v60 = vadd.f32 %v104_v58, %v101_v54  ;;  %v181_v61 = vmul.f32 %v104_v58, %v104_v58  ;;  %v133_v62 = vpop.f32.mrf.mxu1 }
  0xa9   :  { %145 = vst [vmem:[%s440_s4 + $0x18] sm:$0xff] %v133_v62  ;;  %v159_v0 = vadd.f32 %v133_v62, %v130_v55  ;;  %v182_v1 = vmul.f32 %v133_v62, %v133_v62 }
  0xaa   :  { %v187_v2 = vadd.f32 %v181_v61, %v179_v59  ;;  %v151_v5 = vadd.f32 %v150_v60, %v107_v56 }
  0xab   :  { %v196_v3 = vadd.f32 %v182_v1, %v180_v63  ;;  %v160_v8 = vadd.f32 %v159_v0, %v136_v57 }
  0xac   :  { %v188_v11 = vadd.f32 %v187_v2, %v183_v4 }
  0xad   :  { %v110_v7 = vpop.f32.mrf.mxu2  ;;  %v197_v15 = vadd.f32 %v196_v3, %v184_v6 }
  0xae   :  { %148 = vst [vmem:[%s440_s4 + $0x30] sm:$0xff] %v110_v7  ;;  %v152_v9 = vadd.f32 %v151_v5, %v110_v7  ;;  %v185_v10 = vmul.f32 %v110_v7, %v110_v7  ;;  %v139_v12 = vpop.f32.mrf.mxu3 }
  0xaf   :  { %149 = vst [vmem:[%s440_s4 + $0x38] sm:$0xff] %v139_v12  ;;  %v161_v13 = vadd.f32 %v160_v8, %v139_v12  ;;  %v186_v14 = vmul.f32 %v139_v12, %v139_v12 }
  0xb0   :  { %v153_v16 = vrot.slane %v152_v9, 4  ;;  %v189_v17 = vadd.f32 %v188_v11, %v185_v10 }
  0xb1   :  { %v162_v18 = vrot.slane %v161_v13, 4  ;;  %v198_v19 = vadd.f32 %v197_v15, %v186_v14 }
  0xb2   :  { %v154_v20 = vadd.f32 %v153_v16, %v152_v9  ;;  %v190_v21 = vrot.slane %v189_v17, 4 }
  0xb3   :  { %v163_v22 = vadd.f32 %v162_v18, %v161_v13  ;;  %v199_v23 = vrot.slane %v198_v19, 4 }
  0xb4   :  { %v155_v24 = vrot.slane %v154_v20, 2  ;;  %v191_v25 = vadd.f32 %v190_v21, %v189_v17 }
  0xb5   :  { %v164_v26 = vrot.slane %v163_v22, 2  ;;  %v200_v27 = vadd.f32 %v199_v23, %v198_v19 }
  0xb6   :  { %v156_v28 = vadd.f32 %v155_v24, %v154_v20  ;;  %v192_v29 = vrot.slane %v191_v25, 2 }
  0xb7   :  { %v165_v30 = vadd.f32 %v164_v26, %v163_v22  ;;  %v201_v31 = vrot.slane %v200_v27, 2 }
  0xb8   :  { %v193_v32 = vadd.f32 %v192_v29, %v191_v25  ;;  %v157_v33 = vrot.slane %v156_v28, 1 }
  0xb9   :  { %v166_v34 = vrot.slane %v165_v30, 1  ;;  %v202_v36 = vadd.f32 %v201_v31, %v200_v27 }
  0xba   :  { %v194_v37 = vrot.slane %v193_v32, 1  ;;  %v158_v40 = vadd.f32 %v157_v33, %v156_v28 }
  0xbb   :  { %v167_v38 = vadd.f32 %v166_v34, %v165_v30  ;;  %v203_v39 = vrot.slane %v202_v36, 1 }
  0xbc   :  { %v195_v43 = vadd.f32 %v194_v37, %v193_v32 }
  0xbd   :  { %v170_v41 = vrot.slane %v167_v38, 7  ;;  %v204_v42 = vadd.f32 %v203_v39, %v202_v36 }
  0xbf   :  { %v172_v44 = vsel %vm171_vm4, %v158_v40, %v170_v41  ;;  %v207_v45 = vrot.slane %v204_v42, 7 }
  0xc0   :  { %178 = vst.msk [vmem:[%s441_s5] sm:$0x3] %vm176_vm5, %v172_v44 }
  0xc1   :  { %v208_v46 = vsel %vm171_vm4, %v195_v43, %v207_v45 }
  0xc2   :  { %210 = vst.msk [vmem:[%s442_s6] sm:$0x3] %vm176_vm5, %v208_v46 }

// kernel: hffc_block.6
= control target key start
LH: loop header
LB: loop body
LE: loop exit
PB: predicated region body
PF: predicated region fallthrough
CT: control target
= control target key end

     0   :  { %s1482_s24 = smov 0   ;;  %s2360_s0 = inlined_call_operand.vmem [shape: f32[2,18,288], index: 0, kind: input, shape index: {}]   ;;  %s2361_s1 = inlined_call_operand.vmem [shape: f32[1,288], index: 1, kind: input, shape index: {}]   ;;  %s2362_s2 = inlined_call_operand.vmem [shape: f32[1,288], index: 2, kind: input, shape index: {}]   ;;  %s2363_s3 = inlined_call_operand.vmem [shape: f32[18,288], index: 3, kind: input, shape index: {}]   ;;  %s2364_s4 = inlined_call_operand.vmem [shape: f32[3,288,256], index: 4, kind: input, shape index: {}]   ;;  %s2365_s5 = inlined_call_operand.vmem [shape: f32[2,16,256], index: 5, kind: output, shape index: {0}]   ;;  %s2366_s6 = inlined_call_operand.vmem [shape: f32[2,1,256], index: 6, kind: output, shape index: {1}]   ;;  %s2367_s7 = inlined_call_operand.vmem [shape: f32[2,1,256], index: 7, kind: output, shape index: {2}]  }
   0x1 LB: > { %s1256_s25 = sadd.s32 4294967295, %s1440_s24   ;;  %p1260_p0 = scmp.ge.s32.totalorder %s1440_s24, 1  ;;  %s1440_s24 = sphi %s1482_s24, %s18_s24  }
   0x2   : > { %p242_p1 = scmp.lt.s32.totalorder %s1440_s24, 3 }
   0x4   : > { %p243_p2 = pnand %p1260_p0, %p242_p1 }
   0x5   : > { %p1534_p3 = scmp.lt.s32.totalorder (!%p243_p2), %s1256_s25, 1 }
   0x6   : > { %246 = sbr.rel (%p243_p2) target bundleno = 302 (0x12e), region = 40 }
   0xb   : > { %v1296_v0 = vld [vmem:[%s2364_s4 + $0x330] sm:$0xff]  ;;  %v1297_v3 = vld [vmem:[%s2364_s4 + $0x338] sm:$0xff]  ;;  %v1294_v4 = vld [vmem:[%s2364_s4 + $0x320] sm:$0xff]  ;;  %s2370_s25 = smov (!%p1534_p3, %s1256_s25), 1  ;;  %vm542_vm2 = vcmask 1046528   ;;  %vm562_vm5 = vcmask 261120  }
   0xc   : > { %v1328_v1 = vld [vmem:[%s2364_s4 + $0x430] sm:$0xff]  ;;  %567 = vmatpush.msra.mxu0 %v1296_v0  ;;  %v1326_v5 = vld [vmem:[%s2364_s4 + $0x420] sm:$0xff]  ;;  %636 = vmatpush.msra.mxu3 %v1297_v3  ;;  %v1295_v7 = vld [vmem:[%s2364_s4 + $0x328] sm:$0xff]  ;;  %s1425_s22 = smul.u32 72, %s2370_s25  ;;  %vm920_vm11 = vcmask 1045504   ;;  %s1424_s28 = sshll.u32 %s2370_s25, 5 }
   0xd   : > { %v1336_v2 = vld [vmem:[%s2364_s4 + $0x470] sm:$0xff]  ;;  %590 = vmatpush.msra.mxu1 %v1328_v1  ;;  %v1334_v6 = vld [vmem:[%s2364_s4 + $0x460] sm:$0xff]  ;;  %v1293_v11 = vld [vmem:[%s2364_s4 + $0x318] sm:$0xff]  ;;  %s2344_s8 = scalar_lea.vmem %s2365_s5, %s1424_s28  ;;  %vm1107_vm12 = vcmask 1040384  }
   0xe   : > { %625 = vmatpush.msra.mxu2 %v1336_v2  ;;  %v1292_v8 = vld [vmem:[%s2364_s4 + $0x310] sm:$0xff]  ;;  %568 = vmatpush.msra.mxu0 %v1294_v4  ;;  %v1290_v12 = vld [vmem:[%s2364_s4 + $0x300] sm:$0xff]  ;;  %v1291_v15 = vld [vmem:[%s2364_s4 + $0x308] sm:$0xff]  ;;  %s1623_s23 = scalar_lea.vmem %s2360_s0, %s1425_s22  ;;  %s1264_s22 = sshll.u32 %s2370_s25, 1 }
   0xf   : > { %591 = vmatpush.msra.mxu1 %v1326_v5  ;;  %v1324_v9 = vld [vmem:[%s2364_s4 + $0x410] sm:$0xff]  ;;  %637 = vmatpush.msra.mxu3 %v1295_v7  ;;  %v1322_v13 = vld [vmem:[%s2364_s4 + $0x400] sm:$0xff]  ;;  %v1329_v16 = vld [vmem:[%s2364_s4 + $0x438] sm:$0xff]  ;;  %s295_s12 = scalar_lea.vmem %s2366_s6, %s1264_s22  ;;  %s299_s14 = scalar_lea.vmem %s2367_s7, %s1264_s22 }
  0x10   : > { %v1332_v10 = vld [vmem:[%s2364_s4 + $0x450] sm:$0xff]  ;;  %626 = vmatpush.msra.mxu2 %v1334_v6  ;;  %569 = vmatpush.msra.mxu0 %v1292_v8  ;;  %v1330_v14 = vld [vmem:[%s2364_s4 + $0x440] sm:$0xff]  ;;  %v1289_v19 = vld [vmem:[%s2364_s4 + $0x2f8] sm:$0xff] }
  0x11   : > { %592 = vmatpush.msra.mxu1 %v1324_v9  ;;  %638 = vmatpush.msra.mxu3 %v1293_v11  ;;  %v1288_v17 = vld [vmem:[%s2364_s4 + $0x2f0] sm:$0xff]  ;;  %v1327_v20 = vld [vmem:[%s2364_s4 + $0x428] sm:$0xff]  ;;  %v1286_v21 = vld [vmem:[%s2364_s4 + $0x2e0] sm:$0xff] }
  0x12   : > { %627 = vmatpush.msra.mxu2 %v1332_v10  ;;  %570 = vmatpush.msra.mxu0 %v1290_v12  ;;  %v1320_v18 = vld [vmem:[%s2364_s4 + $0x3f0] sm:$0xff]  ;;  %v1318_v22 = vld [vmem:[%s2364_s4 + $0x3e0] sm:$0xff]  ;;  %v1287_v23 = vld [vmem:[%s2364_s4 + $0x2e8] sm:$0xff] }
  0x13   : > { %593 = vmatpush.msra.mxu1 %v1322_v13  ;;  %639 = vmatpush.msra.mxu3 %v1291_v15  ;;  %v1325_v24 = vld [vmem:[%s2364_s4 + $0x418] sm:$0xff]  ;;  %v1284_v25 = vld [vmem:[%s2364_s4 + $0x2d0] sm:$0xff]  ;;  %v1323_v28 = vld [vmem:[%s2364_s4 + $0x408] sm:$0xff] }
  0x14   : > { %628 = vmatpush.msra.mxu2 %v1330_v14  ;;  %571 = vmatpush.msra.mxu0 %v1288_v17  ;;  %v1316_v26 = vld [vmem:[%s2364_s4 + $0x3d0] sm:$0xff]  ;;  %v1285_v27 = vld [vmem:[%s2364_s4 + $0x2d8] sm:$0xff]  ;;  %v1282_v29 = vld [vmem:[%s2364_s4 + $0x2c0] sm:$0xff] }
  0x15   : > { %594 = vmatpush.msra.mxu1 %v1320_v18  ;;  %640 = vmatpush.msra.mxu3 %v1289_v19  ;;  %v1314_v30 = vld [vmem:[%s2364_s4 + $0x3c0] sm:$0xff]  ;;  %v1283_v31 = vld [vmem:[%s2364_s4 + $0x2c8] sm:$0xff]  ;;  %v1321_v32 = vld [vmem:[%s2364_s4 + $0x3f8] sm:$0xff] }
  0x16   : > { %659 = vmatpush.msrb.mxu2 %v1329_v16  ;;  %572 = vmatpush.msra.mxu0 %v1286_v21  ;;  %v1280_v33 = vld [vmem:[%s2364_s4 + $0x2b0] sm:$0xff]  ;;  %v1281_v35 = vld [vmem:[%s2364_s4 + $0x2b8] sm:$0xff]  ;;  %v1319_v36 = vld [vmem:[%s2364_s4 + $0x3e8] sm:$0xff] }
  0x17   : > { %595 = vmatpush.msra.mxu1 %v1318_v22  ;;  %641 = vmatpush.msra.mxu3 %v1287_v23  ;;  %v1312_v34 = vld [vmem:[%s2364_s4 + $0x3b0] sm:$0xff]  ;;  %v1278_v37 = vld [vmem:[%s2364_s4 + $0x2a0] sm:$0xff]  ;;  %v1279_v39 = vld [vmem:[%s2364_s4 + $0x2a8] sm:$0xff] }
  0x18   : > { %660 = vmatpush.msrb.mxu2 %v1327_v20  ;;  %573 = vmatpush.msra.mxu0 %v1284_v25  ;;  %v1310_v38 = vld [vmem:[%s2364_s4 + $0x3a0] sm:$0xff]  ;;  %v1317_v40 = vld [vmem:[%s2364_s4 + $0x3d8] sm:$0xff]  ;;  %v1276_v41 = vld [vmem:[%s2364_s4 + $0x290] sm:$0xff] }
  0x19   : > { %596 = vmatpush.msra.mxu1 %v1316_v26  ;;  %642 = vmatpush.msra.mxu3 %v1285_v27  ;;  %v1308_v42 = vld [vmem:[%s2364_s4 + $0x390] sm:$0xff]  ;;  %v1277_v43 = vld [vmem:[%s2364_s4 + $0x298] sm:$0xff]  ;;  %v1315_v44 = vld [vmem:[%s2364_s4 + $0x3c8] sm:$0xff] }
  0x1a   : > { %661 = vmatpush.msrb.mxu2 %v1325_v24  ;;  %574 = vmatpush.msra.mxu0 %v1282_v29  ;;  %v1274_v45 = vld [vmem:[%s2364_s4 + $0x280] sm:$0xff]  ;;  %v302_v47 = vld [vmem:[%s1623_s23 + $0x10] sm:$0xff]  ;;  %v305_v48 = vld [vmem:[%s1623_s23 + $0x28] sm:$0xff] }
  0x1b   : > { %597 = vmatpush.msra.mxu1 %v1314_v30  ;;  %643 = vmatpush.msra.mxu3 %v1283_v31  ;;  %v1306_v46 = vld [vmem:[%s2364_s4 + $0x380] sm:$0xff]  ;;  %v1275_v51 = vld [vmem:[%s2364_s4 + $0x288] sm:$0xff]  ;;  %v1313_v52 = vld [vmem:[%s2364_s4 + $0x3b8] sm:$0xff] }
  0x1c   : > { %662 = vmatpush.msrb.mxu2 %v1323_v28  ;;  %575 = vmatpush.msra.mxu0 %v1280_v33  ;;  %v309_v49 = vld [vmem:[%s2361_s1] sm:$0x7]  ;;  %v1272_v53 = vld [vmem:[%s2364_s4 + $0x270] sm:$0xff]  ;;  %v1273_v58 = vld [vmem:[%s2364_s4 + $0x278] sm:$0xff] }
  0x1d   : > { %598 = vmatpush.msra.mxu1 %v1312_v34  ;;  %644 = vmatpush.msra.mxu3 %v1281_v35  ;;  %v326_v50 = vld [vmem:[%s2362_s2] sm:$0x7]  ;;  %v1666_v54 = vperm.slane %v309_v49, 2  ;;  %v1670_v56 = vperm.slane %v309_v49, 0  ;;  %v1304_v57 = vld [vmem:[%s2364_s4 + $0x370] sm:$0xff]  ;;  %v1311_v59 = vld [vmem:[%s2364_s4 + $0x3a8] sm:$0xff] }
  0x1e   : > { %663 = vmatpush.msrb.mxu2 %v1321_v32  ;;  %576 = vmatpush.msra.mxu0 %v1278_v37  ;;  %v1668_v55 = vperm.slane %v326_v50, 2  ;;  %v1270_v60 = vld [vmem:[%s2364_s4 + $0x260] sm:$0xff]  ;;  %v1271_v62 = vld [vmem:[%s2364_s4 + $0x268] sm:$0xff]  ;;  %v1309_v1 = vld [vmem:[%s2364_s4 + $0x398] sm:$0xff]  ;;  %v1699_v4 = vperm.slane %v326_v50, 0  ;;  %v1701_v5 = vperm.slane %v309_v49, 1 }
  0x1f   : > { %599 = vmatpush.msra.mxu1 %v1310_v38  ;;  %645 = vmatpush.msra.mxu3 %v1279_v39  ;;  %v1302_v61 = vld [vmem:[%s2364_s4 + $0x360] sm:$0xff]  ;;  %v319_v63 = vmul.f32 %v1666_v54, %v302_v47  ;;  %v322_v0 = vmul.f32 %v1666_v54, %v305_v48  ;;  %v1268_v2 = vld [vmem:[%s2364_s4 + $0x250] sm:$0xff]  ;;  %v375_v10 = vld [vmem:[%s2363_s3 + $0x28] sm:$0xff]  ;;  %v1725_v18 = vperm.slane %v326_v50, 1 }
  0x20   : > { %664 = vmatpush.msrb.mxu2 %v1319_v36  ;;  %577 = vmatpush.msra.mxu0 %v1276_v41  ;;  %v300_v3 = vld [vmem:[%s1623_s23] sm:$0xff]  ;;  %v1300_v6 = vld [vmem:[%s2364_s4 + $0x350] sm:$0xff]  ;;  %v1269_v11 = vld [vmem:[%s2364_s4 + $0x258] sm:$0xff] }
  0x21   : > { %600 = vmatpush.msra.mxu1 %v1308_v42  ;;  %646 = vmatpush.msra.mxu3 %v1277_v43  ;;  %v336_v7 = vadd.f32 %v1668_v55, %v319_v63  ;;  %v339_v8 = vadd.f32 %v1668_v55, %v322_v0  ;;  %v372_v9 = vld [vmem:[%s2363_s3 + $0x10] sm:$0xff]  ;;  %v303_v12 = vld [vmem:[%s1623_s23 + $0x18] sm:$0xff]  ;;  %v317_v13 = vmul.f32 %v1670_v56, %v300_v3  ;;  %v1307_v14 = vld [vmem:[%s2364_s4 + $0x388] sm:$0xff] }
  0x22   : > { %665 = vmatpush.msrb.mxu2 %v1317_v40  ;;  %578 = vmatpush.msra.mxu0 %v1274_v45  ;;  %v320_v15 = vmul.f32 %v1670_v56, %v303_v12  ;;  %v301_v16 = vld [vmem:[%s1623_s23 + $0x8] sm:$0xff]  ;;  %v304_v17 = vld [vmem:[%s1623_s23 + $0x20] sm:$0xff]  ;;  %v1305_v29 = vld [vmem:[%s2364_s4 + $0x378] sm:$0xff] }
  0x23   : > { %601 = vmatpush.msra.mxu1 %v1306_v46  ;;  %647 = vmatpush.msra.mxu3 %v1275_v51  ;;  %vm345_vm0 = vcmp.ge.f32.partialorder %v336_v7, 0.0  ;;  %vm348_vm1 = vcmp.ge.f32.partialorder %v339_v8, 0.0  ;;  %v354_v19 = vmul.f32 0.01, %v336_v7  ;;  %v357_v20 = vmul.f32 0.01, %v339_v8 }
  0x24   : > { %666 = vmatpush.msrb.mxu2 %v1315_v44  ;;  %579 = vmatpush.msra.mxu0 %v1272_v53  ;;  %v1266_v21 = vld [vmem:[%s2364_s4 + $0x240] sm:$0xff]  ;;  %v1267_v23 = vld [vmem:[%s2364_s4 + $0x248] sm:$0xff]  ;;  %v334_v24 = vadd.f32 %v1699_v4, %v317_v13  ;;  %v337_v25 = vadd.f32 %v1699_v4, %v320_v15  ;;  %v318_v26 = vmul.f32 %v1701_v5, %v301_v16  ;;  %v1337_v30 = vld [vmem:[%s2364_s4 + $0x478] sm:$0xff] }
  0x25   : > { %602 = vmatpush.msra.mxu1 %v1304_v57  ;;  %648 = vmatpush.msra.mxu3 %v1273_v58  ;;  %v1298_v22 = vld [vmem:[%s2364_s4 + $0x340] sm:$0xff]  ;;  %v363_v27 = vsel %vm345_vm0, %v336_v7, %v354_v19  ;;  %v366_v28 = vsel %vm348_vm1, %v339_v8, %v357_v20  ;;  %v418_v31 = vld [vmem:[%s2364_s4 + $0xf0] sm:$0xff]  ;;  %v321_v32 = vmul.f32 %v1701_v5, %v304_v17  ;;  %v373_v37 = vld [vmem:[%s2363_s3 + $0x18] sm:$0xff] }
  0x26   : > { %667 = vmatpush.msrb.mxu2 %v1313_v52  ;;  %580 = vmatpush.msra.mxu0 %v1270_v60  ;;  %v1749_v33 = vmul.f32 %v372_v9, %v363_v27  ;;  %v1751_v34 = vmul.f32 %v375_v10, %v366_v28  ;;  %v450_v35 = vld [vmem:[%s2364_s4 + $0x1f0] sm:$0xff]  ;;  %vm343_vm3 = vcmp.ge.f32.partialorder %v334_v24, 0.0  ;;  %vm346_vm4 = vcmp.ge.f32.partialorder %v337_v25, 0.0  ;;  %v370_v36 = vld [vmem:[%s2363_s3] sm:$0xff]  ;;  %v371_v45 = vld [vmem:[%s2363_s3 + $0x8] sm:$0xff] }
  0x27   : > { %603 = vmatpush.msra.mxu1 %v1302_v61  ;;  %649 = vmatpush.msra.mxu3 %v1271_v62  ;;  %v352_v38 = vmul.f32 0.01, %v334_v24  ;;  %v355_v39 = vmul.f32 0.01, %v337_v25  ;;  %v335_v40 = vadd.f32 %v1725_v18, %v318_v26  ;;  %v338_v41 = vadd.f32 %v1725_v18, %v321_v32  ;;  %v308_v42 = vld [vmem:[%s1623_s23 + $0x40] sm:$0x3] }
  0x28   : > { %668 = vmatpush.msrb.mxu2 %v1311_v59  ;;  %581 = vmatpush.msra.mxu0 %v1268_v2  ;;  %v549_v43 = vrot.slane %v1749_v33, 1  ;;  %v550_v44 = vrot.slane %v1751_v34, 1  ;;  %v1335_v46 = vld [vmem:[%s2364_s4 + $0x468] sm:$0xff]  ;;  %v325_v47 = vmul.f32 %v1666_v54, %v308_v42  ;;  %v374_v50 = vld [vmem:[%s2363_s3 + $0x20] sm:$0xff]  ;;  %v1301_v60 = vld [vmem:[%s2364_s4 + $0x358] sm:$0xff] }
  0x29   : > { %604 = vmatpush.msra.mxu1 %v1300_v6  ;;  %650 = vmatpush.msra.mxu3 %v1269_v11  ;;  %v361_v48 = vsel %vm343_vm3, %v334_v24, %v352_v38  ;;  %v364_v49 = vsel %vm346_vm4, %v337_v25, %v355_v39  ;;  %vm344_vm6 = vcmp.ge.f32.partialorder %v335_v40, 0.0  ;;  %vm347_vm7 = vcmp.ge.f32.partialorder %v338_v41, 0.0  ;;  %v1303_v51 = vld [vmem:[%s2364_s4 + $0x368] sm:$0xff]  ;;  %v416_v52 = vld [vmem:[%s2364_s4 + $0xe0] sm:$0xff]  ;;  %v1333_v61 = vld [vmem:[%s2364_s4 + $0x458] sm:$0xff] }
  0x2a   : > { %669 = vmatpush.msrb.mxu2 %v1309_v1  ;;  %582 = vmatpush.msra.mxu0 %v1266_v21  ;;  %v1788_v53 = vsel %vm542_vm2, %v549_v43, %v550_v44  ;;  %v1790_v54 = vmul.f32 %v370_v36, %v361_v48  ;;  %v1792_v57 = vmul.f32 %v373_v37, %v364_v49  ;;  %v353_v58 = vmul.f32 0.01, %v335_v40  ;;  %v448_v59 = vld [vmem:[%s2364_s4 + $0x1e0] sm:$0xff]  ;;  %v414_v63 = vld [vmem:[%s2364_s4 + $0xd0] sm:$0xff]  ;;  %v307_v10 = vld [vmem:[%s1623_s23 + $0x38] sm:$0x3] }
  0x2b   : > { %605 = vmatpush.msra.mxu1 %v1298_v22  ;;  %651 = vmatpush.msra.mxu3 %v1267_v23  ;;  %v356_v62 = vmul.f32 0.01, %v338_v41  ;;  %v446_v0 = vld [vmem:[%s2364_s4 + $0x1d0] sm:$0xff]  ;;  %v342_v1 = vadd.f32 %v1668_v55, %v325_v47  ;;  %v378_v8 = vld [vmem:[%s2363_s3 + $0x40] sm:$0x3]  ;;  %v1299_v13 = vld [vmem:[%s2364_s4 + $0x348] sm:$0xff] }
  0x2c   : > { %670 = vmatpush.msrb.mxu2 %v1307_v14  ;;  %694 = vmatpush.msrb.mxu0 %v1337_v30  ;;  %v306_v2 = vld [vmem:[%s1623_s23 + $0x30] sm:$0x3]  ;;  %v543_v3 = vrot.slane %v1790_v54, 1  ;;  %v544_v6 = vrot.slane %v1792_v57, 1  ;;  %v362_v7 = vsel %vm344_vm6, %v335_v40, %v353_v58  ;;  %v1331_v14 = vld [vmem:[%s2364_s4 + $0x448] sm:$0xff]  ;;  %v412_v16 = vld [vmem:[%s2364_s4 + $0xc0] sm:$0xff] }
  0x2d   : > { %709 = vmatpush.msrb.mxu1 %v418_v31  ;;  %732 = vmatpush.msrb.mxu3 %v450_v35  ;;  %v323_v9 = vmul.f32 %v1670_v56, %v306_v2  ;;  %v365_v11 = vsel %vm347_vm7, %v338_v41, %v356_v62  ;;  %v1822_v12 = vmul.f32 %v371_v45, %v362_v7  ;;  %vm351_vm8 = vcmp.ge.f32.partialorder %v342_v1, 0.0  ;;  %v444_v17 = vld [vmem:[%s2364_s4 + $0x1c0] sm:$0xff]  ;;  %v458_v22 = vld [vmem:[%s2364_s4 + $0x230] sm:$0xff]  ;;  %v419_v23 = vld [vmem:[%s2364_s4 + $0xf8] sm:$0xff] }
  0x2e   : > { %671 = vmatpush.msrb.mxu2 %v1305_v29  ;;  %695 = vmatpush.msrb.mxu0 %v1335_v46  ;;  %v360_v55 = vmul.f32 0.01, %v342_v1  ;;  %v1833_v56 = vsel %vm542_vm2, %v543_v3, %v544_v6  ;;  %v1835_v15 = vmul.f32 %v374_v50, %v365_v11  ;;  %v442_v24 = vld [vmem:[%s2364_s4 + $0x1b0] sm:$0xff]  ;;  %v417_v35 = vld [vmem:[%s2364_s4 + $0xe8] sm:$0xff]  ;;  %v377_v37 = vld [vmem:[%s2363_s3 + $0x38] sm:$0x3] }
  0x2f   : > { %1338 = vmatmul.msk.f32.vlgmr.msra.gmra.mxu2 %vm562_vm5, %v1788_v53  ;;  %710 = vmatpush.msrb.mxu1 %v416_v52  ;;  %v340_v19 = vadd.f32 %v1699_v4, %v323_v9  ;;  %v546_v20 = vrot.slane %v1822_v12, 1  ;;  %v324_v4 = vmul.f32 %v1701_v5, %v307_v10  ;;  %v376_v28 = vld [vmem:[%s2363_s3 + $0x30] sm:$0x3]  ;;  %v456_v5 = vld [vmem:[%s2364_s4 + $0x220] sm:$0xff]  ;;  %v415_v43 = vld [vmem:[%s2364_s4 + $0xd8] sm:$0xff] }
  0x30   : > { %672 = vmatpush.msrb.mxu2 %v1303_v51  ;;  %733 = vmatpush.msrb.mxu3 %v448_v59  ;;  %v369_v21 = vsel %vm351_vm8, %v342_v1, %v360_v55  ;;  %v547_v25 = vrot.slane %v1835_v15, 1  ;;  %v410_v29 = vld [vmem:[%s2364_s4 + $0xb0] sm:$0xff]  ;;  %v408_v39 = vld [vmem:[%s2364_s4 + $0xa0] sm:$0xff]  ;;  %v413_v51 = vld [vmem:[%s2364_s4 + $0xc8] sm:$0xff] }
  0x31   : > { %696 = vmatpush.msrb.mxu0 %v1333_v61  ;;  %711 = vmatpush.msrb.mxu1 %v414_v63  ;;  %v1857_v26 = vmul.f32 %v378_v8, %v369_v21  ;;  %vm349_vm9 = vcmp.ge.f32.partialorder %v340_v19, 0.0  ;;  %v358_v27 = vmul.f32 0.01, %v340_v19  ;;  %v341_v30 = vadd.f32 %v1725_v18, %v324_v4  ;;  %v440_v40 = vld [vmem:[%s2364_s4 + $0x1a0] sm:$0xff]  ;;  %v454_v42 = vld [vmem:[%s2364_s4 + $0x210] sm:$0xff]  ;;  %v451_v63 = vld [vmem:[%s2364_s4 + $0x1f8] sm:$0xff] }
  0x32   : > { %673 = vmatpush.msrb.mxu2 %v1301_v60  ;;  %583 = vmatmul.f32.vlgmr.msra.gmra.mxu0 %v1833_v56  ;;  %v548_v31 = vsel %vm542_vm2, %v546_v20, %v547_v25  ;;  %v438_v48 = vld [vmem:[%s2364_s4 + $0x190] sm:$0xff]  ;;  %v452_v49 = vld [vmem:[%s2364_s4 + $0x200] sm:$0xff]  ;;  %v411_v60 = vld [vmem:[%s2364_s4 + $0xb8] sm:$0xff] }
  0x33   : > { %734 = vmatpush.msrb.mxu3 %v446_v0  ;;  %697 = vmatpush.msrb.mxu0 %v1331_v14  ;;  %v556_v32 = vrot.slane %v1857_v26, 1  ;;  %v367_v36 = vsel %vm349_vm9, %v340_v19, %v358_v27  ;;  %vm350_vm10 = vcmp.ge.f32.partialorder %v341_v30, 0.0  ;;  %v359_v18 = vmul.f32 0.01, %v341_v30  ;;  %v436_v58 = vld [vmem:[%s2364_s4 + $0x180] sm:$0xff]  ;;  %v434_v62 = vld [vmem:[%s2364_s4 + $0x170] sm:$0xff] }
  0x34   : > { %674 = vmatpush.msrb.mxu2 %v1299_v13  ;;  %712 = vmatpush.msrb.mxu1 %v412_v16  ;;  %v1877_v38 = vmul.f32 %v376_v28, %v367_v36  ;;  %v404_v59 = vld [vmem:[%s2364_s4 + $0x80] sm:$0xff]  ;;  %v402_v0 = vld [vmem:[%s2364_s4 + $0x70] sm:$0xff]  ;;  %v409_v1 = vld [vmem:[%s2364_s4 + $0xa8] sm:$0xff] }
  0x35   : > { %735 = vmatpush.msrb.mxu3 %v444_v17  ;;  %778 = vmatpush.msra.mxu0 %v419_v23  ;;  %v1888_v41 = vsel %vm542_vm2, %v550_v44, %v556_v32  ;;  %v368_v46 = vsel %vm350_vm10, %v341_v30, %v359_v18  ;;  %v406_v44 = vld [vmem:[%s2364_s4 + $0x90] sm:$0xff]  ;;  %v432_v2 = vld [vmem:[%s2364_s4 + $0x160] sm:$0xff]  ;;  %v449_v3 = vld [vmem:[%s2364_s4 + $0x1e8] sm:$0xff] }
  0x36   : > { %767 = vmatpush.msra.mxu2 %v458_v22  ;;  %606 = vmatmul.f32.vlgmr.msra.gmra.mxu1 %v548_v31  ;;  %v552_v45 = vrot.slane %v1877_v38, 1  ;;  %v1902_v47 = vmul.f32 %v377_v37, %v368_v46  ;;  %v407_v7 = vld [vmem:[%s2364_s4 + $0x98] sm:$0xff]  ;;  %v430_v8 = vld [vmem:[%s2364_s4 + $0x150] sm:$0xff]  ;;  %v405_v11 = vld [vmem:[%s2364_s4 + $0x88] sm:$0xff] }
  0x37   : > { %736 = vmatpush.msrb.mxu3 %v442_v24  ;;  %713 = vmatpush.msrb.mxu1 %v410_v29  ;;  %v447_v9 = vld [vmem:[%s2364_s4 + $0x1d8] sm:$0xff]  ;;  %v398_v10 = vld [vmem:[%s2364_s4 + $0x50] sm:$0xff]  ;;  %v428_v55 = vld [vmem:[%s2364_s4 + $0x140] sm:$0xff] }
  0x38   : > { %768 = vmatpush.msra.mxu2 %v456_v5  ;;  %779 = vmatpush.msra.mxu0 %v417_v35  ;;  %v553_v50 = vsel %vm542_vm2, %v544_v6, %v552_v45  ;;  %v554_v52 = vrot.slane %v1902_v47, 1  ;;  %v400_v6 = vld [vmem:[%s2364_s4 + $0x60] sm:$0xff]  ;;  %v445_v13 = vld [vmem:[%s2364_s4 + $0x1c8] sm:$0xff]  ;;  %v403_v16 = vld [vmem:[%s2364_s4 + $0x78] sm:$0xff]  ;;  %v922_v45 = vrot.slane %v1792_v57, 2 }
  0x39   : > { %1339 = vmatmul.msk.f32.gmra.mxu2 %vm562_vm5, %v1888_v41  ;;  %714 = vmatpush.msrb.mxu1 %v408_v39  ;;  %v396_v14 = vld [vmem:[%s2364_s4 + $0x40] sm:$0xff]  ;;  %v394_v17 = vld [vmem:[%s2364_s4 + $0x30] sm:$0xff]  ;;  %v441_v20 = vld [vmem:[%s2364_s4 + $0x1a8] sm:$0xff] }
  0x3a   : > { %737 = vmatpush.msrb.mxu3 %v440_v40  ;;  %769 = vmatpush.msra.mxu2 %v454_v42  ;;  %v555_v61 = vsel %vm542_vm2, %v547_v25, %v554_v52  ;;  %v426_v19 = vld [vmem:[%s2364_s4 + $0x130] sm:$0xff]  ;;  %v392_v21 = vld [vmem:[%s2364_s4 + $0x20] sm:$0xff]  ;;  %v439_v23 = vld [vmem:[%s2364_s4 + $0x198] sm:$0xff] }
  0x3b   : > { %780 = vmatpush.msra.mxu0 %v415_v43  ;;  %715 = vmatpush.msrb.mxu1 %v406_v44  ;;  %v424_v22 = vld [vmem:[%s2364_s4 + $0x120] sm:$0xff]  ;;  %v399_v24 = vld [vmem:[%s2364_s4 + $0x58] sm:$0xff]  ;;  %v390_v4 = vld [vmem:[%s2364_s4 + $0x10] sm:$0xff]  ;;  %v921_v43 = vrot.slane %v1790_v54, 2 }
  0x3c   : > { %586 = vmatmul.f32.gmra.mxu0 %v553_v50  ;;  %738 = vmatpush.msrb.mxu3 %v438_v48  ;;  %v422_v25 = vld [vmem:[%s2364_s4 + $0x110] sm:$0xff]  ;;  %v437_v27 = vld [vmem:[%s2364_s4 + $0x188] sm:$0xff]  ;;  %v388_v29 = vld [vmem:[%s2364_s4] sm:$0xff] }
  0x3d   : > { %770 = vmatpush.msra.mxu2 %v452_v49  ;;  %781 = vmatpush.msra.mxu0 %v413_v51  ;;  %v397_v28 = vld [vmem:[%s2364_s4 + $0x48] sm:$0xff]  ;;  %v420_v5 = vld [vmem:[%s2364_s4 + $0x100] sm:$0xff]  ;;  %v435_v30 = vld [vmem:[%s2364_s4 + $0x178] sm:$0xff]  ;;  %v2074_v49 = vsel %vm920_vm11, %v921_v43, %v922_v45 }
  0x3e   : > { %652 = vmatmul.f32.vlgmr.msra.gmra.mxu3 %v1833_v56  ;;  %609 = vmatmul.f32.gmra.mxu1 %v555_v61  ;;  %v443_v56 = vld [vmem:[%s2364_s4 + $0x1b8] sm:$0xff]  ;;  %v1376_v32 = vld [vmem:[%s2364_s4 + $0x570] sm:$0xff]  ;;  %v433_v35 = vld [vmem:[%s2364_s4 + $0x168] sm:$0xff] }
  0x3f   : > { %739 = vmatpush.msrb.mxu3 %v436_v58  ;;  %716 = vmatpush.msrb.mxu1 %v404_v59  ;;  %v459_v36 = vld [vmem:[%s2364_s4 + $0x238] sm:$0xff]  ;;  %v393_v37 = vld [vmem:[%s2364_s4 + $0x28] sm:$0xff]  ;;  %v1374_v18 = vld [vmem:[%s2364_s4 + $0x560] sm:$0xff] }
  0x40   : > { %782 = vmatpush.msra.mxu0 %v411_v60  ;;  %v431_v39 = vld [vmem:[%s2364_s4 + $0x158] sm:$0xff]  ;;  %v457_v40 = vld [vmem:[%s2364_s4 + $0x228] sm:$0xff]  ;;  %v1372_v42 = vld [vmem:[%s2364_s4 + $0x550] sm:$0xff] }
  0x41   : > { %675 = vmatmul.f32.vlgmr.msrb.gmra.mxu2 %v548_v31  ;;  %740 = vmatpush.msrb.mxu3 %v434_v62  ;;  %v395_v31 = vld [vmem:[%s2364_s4 + $0x38] sm:$0xff]  ;;  %v429_v46 = vld [vmem:[%s2364_s4 + $0x148] sm:$0xff]  ;;  %v1408_v52 = vld [vmem:[%s2364_s4 + $0x670] sm:$0xff]  ;;  %v925_v62 = vrot.slane %v1835_v15, 2 }
  0x42   : > { %801 = vmatpush.msrb.mxu2 %v451_v63  ;;  %717 = vmatpush.msrb.mxu1 %v402_v0  ;;  %v455_v44 = vld [vmem:[%s2364_s4 + $0x218] sm:$0xff]  ;;  %v389_v48 = vld [vmem:[%s2364_s4 + $0x8] sm:$0xff]  ;;  %v1368_v58 = vld [vmem:[%s2364_s4 + $0x530] sm:$0xff] }
  0x43   : > { %783 = vmatpush.msra.mxu0 %v409_v1  ;;  %741 = vmatpush.msrb.mxu3 %v432_v2  ;;  %v427_v51 = vld [vmem:[%s2364_s4 + $0x138] sm:$0xff]  ;;  %v425_v59 = vld [vmem:[%s2364_s4 + $0x128] sm:$0xff]  ;;  %v1406_v60 = vld [vmem:[%s2364_s4 + $0x660] sm:$0xff] }
  0x44   : > { %802 = vmatpush.msrb.mxu2 %v449_v3  ;;  %718 = vmatpush.msrb.mxu1 %v400_v6  ;;  %v1366_v63 = vld [vmem:[%s2364_s4 + $0x520] sm:$0xff]  ;;  %v423_v0 = vld [vmem:[%s2364_s4 + $0x118] sm:$0xff]  ;;  %v1404_v1 = vld [vmem:[%s2364_s4 + $0x650] sm:$0xff]  ;;  %v930_v6 = vrot.slane %v1877_v38, 2 }
  0x45   : > { %784 = vmatpush.msra.mxu0 %v407_v7  ;;  %742 = vmatpush.msrb.mxu3 %v430_v8  ;;  %v1416_v2 = vld [vmem:[%s2364_s4 + $0x6b0] sm:$0xff]  ;;  %v421_v8 = vld [vmem:[%s2364_s4 + $0x108] sm:$0xff]  ;;  %v1362_v38 = vld [vmem:[%s2364_s4 + $0x500] sm:$0xff] }
  0x46   : > { %803 = vmatpush.msrb.mxu2 %v447_v9  ;;  %719 = vmatpush.msrb.mxu1 %v398_v10  ;;  %v1364_v7 = vld [vmem:[%s2364_s4 + $0x510] sm:$0xff]  ;;  %v1402_v9 = vld [vmem:[%s2364_s4 + $0x640] sm:$0xff]  ;;  %v2130_v10 = vsel %vm920_vm11, %v922_v45, %v930_v6  ;;  %v1399_v43 = vld [vmem:[%s2364_s4 + $0x628] sm:$0xff]  ;;  %v934_v6 = vrot.slane %v1857_v26, 2 }
  0x47   : > { %785 = vmatpush.msra.mxu0 %v405_v11  ;;  %743 = vmatpush.msrb.mxu3 %v428_v55  ;;  %v1377_v11 = vld [vmem:[%s2364_s4 + $0x578] sm:$0xff]  ;;  %v1414_v55 = vld [vmem:[%s2364_s4 + $0x6a0] sm:$0xff]  ;;  %v1384_v45 = vld [vmem:[%s2364_s4 + $0x5b0] sm:$0xff] }
  0x48   : > { %804 = vmatpush.msrb.mxu2 %v445_v13  ;;  %1340 = vmatmul.msk.f32.vlgmr.msrb.gmra.mxu0 %vm562_vm5, %v1788_v53  ;;  %v401_v53 = vld [vmem:[%s2364_s4 + $0x68] sm:$0xff]  ;;  %v1400_v13 = vld [vmem:[%s2364_s4 + $0x630] sm:$0xff] }
  0x49   : > { %678 = vmatmul.f32.gmra.mxu2 %v555_v61  ;;  %720 = vmatpush.msrb.mxu1 %v396_v14  ;;  %v453_v61 = vld [vmem:[%s2364_s4 + $0x208] sm:$0xff]  ;;  %v1360_v14 = vld [vmem:[%s2364_s4 + $0x4f0] sm:$0xff] }
  0x4a   : > { %805 = vmatpush.msrb.mxu2 %v443_v56  ;;  %655 = vmatmul.f32.gmra.mxu3 %v553_v50  ;;  %v1370_v50 = vld [vmem:[%s2364_s4 + $0x540] sm:$0xff]  ;;  %v1375_v56 = vld [vmem:[%s2364_s4 + $0x568] sm:$0xff] }
  0x4b   : > { %786 = vmatpush.msra.mxu0 %v403_v16  ;;  %721 = vmatpush.msrb.mxu1 %v394_v17  ;;  %v1412_v16 = vld [vmem:[%s2364_s4 + $0x690] sm:$0xff]  ;;  %v1358_v17 = vld [vmem:[%s2364_s4 + $0x4e0] sm:$0xff]  ;;  %v1387_v26 = vld [vmem:[%s2364_s4 + $0x5c8] sm:$0xff] }
  0x4c   : > { %744 = vmatpush.msrb.mxu3 %v426_v19  ;;  %806 = vmatpush.msrb.mxu2 %v441_v20  ;;  %v932_v19 = vrot.slane %v1902_v47, 2  ;;  %v1373_v20 = vld [vmem:[%s2364_s4 + $0x558] sm:$0xff]  ;;  %v1356_v47 = vld [vmem:[%s2364_s4 + $0x4d0] sm:$0xff] }
  0x4d   : > { %787 = vmatpush.msra.mxu0 %v401_v53  ;;  %722 = vmatpush.msrb.mxu1 %v392_v21  ;;  %v1410_v53 = vld [vmem:[%s2364_s4 + $0x680] sm:$0xff] }
  0x4e   : > { %745 = vmatpush.msrb.mxu3 %v424_v22  ;;  %807 = vmatpush.msrb.mxu2 %v439_v23  ;;  %v2172_v21 = vsel %vm920_vm11, %v925_v62, %v932_v19  ;;  %v1371_v22 = vld [vmem:[%s2364_s4 + $0x548] sm:$0xff]  ;;  %v1409_v23 = vld [vmem:[%s2364_s4 + $0x678] sm:$0xff] }
  0x4f   : > { %788 = vmatpush.msra.mxu0 %v399_v24  ;;  %723 = vmatpush.msrb.mxu1 %v390_v4  ;;  %v1394_v24 = vld [vmem:[%s2364_s4 + $0x600] sm:$0xff] }
  0x50   : > { %746 = vmatpush.msrb.mxu3 %v422_v25  ;;  %808 = vmatpush.msrb.mxu2 %v437_v27  ;;  %v1354_v4 = vld [vmem:[%s2364_s4 + $0x4c0] sm:$0xff]  ;;  %v1369_v25 = vld [vmem:[%s2364_s4 + $0x538] sm:$0xff]  ;;  %v1407_v27 = vld [vmem:[%s2364_s4 + $0x668] sm:$0xff] }
  0x51   : > { %1342 = vmatmul.msk.f32.vlgmr.msra.gmra.mxu2 %vm562_vm5, %v1749_v33  ;;  %789 = vmatpush.msra.mxu0 %v397_v28  ;;  %v1392_v28 = vld [vmem:[%s2364_s4 + $0x5f0] sm:$0xff] }
  0x52   : > { %1341 = vmatmul.msk.f32.gmra.mxu0 %vm562_vm5, %v1888_v41  ;;  %724 = vmatpush.msrb.mxu1 %v388_v29  ;;  %v391_v41 = vld [vmem:[%s2364_s4 + $0x18] sm:$0xff]  ;;  %v1352_v29 = vld [vmem:[%s2364_s4 + $0x4b0] sm:$0xff] }
  0x53   : > { %747 = vmatpush.msrb.mxu3 %v420_v5  ;;  %809 = vmatpush.msrb.mxu2 %v435_v30  ;;  %v1367_v5 = vld [vmem:[%s2364_s4 + $0x528] sm:$0xff]  ;;  %v1405_v30 = vld [vmem:[%s2364_s4 + $0x658] sm:$0xff] }
  0x54   : > { %725 = vmatmul.f32.vlgmr.msrb.gmra.mxu1 %v1790_v54  ;;  %748 = vmatmul.f32.vlgmr.msrb.gmra.mxu3 %v1822_v12 }
  0x55   : > { %790 = vmatpush.msra.mxu0 %v395_v31  ;;  %944 = vmatpush.msra.mxu3 %v1376_v32  ;;  %v1390_v31 = vld [vmem:[%s2364_s4 + $0x5e0] sm:$0xff] }
  0x56   : > { %810 = vmatpush.msrb.mxu2 %v433_v35  ;;  %836 = vmatpush.msra.mxu1 %v459_v36  ;;  %v1350_v32 = vld [vmem:[%s2364_s4 + $0x4a0] sm:$0xff]  ;;  %v1403_v35 = vld [vmem:[%s2364_s4 + $0x648] sm:$0xff]  ;;  %v1388_v36 = vld [vmem:[%s2364_s4 + $0x5d0] sm:$0xff] }
  0x57   : > { %791 = vmatpush.msra.mxu0 %v393_v37  ;;  %945 = vmatpush.msra.mxu3 %v1374_v18  ;;  %v1348_v37 = vld [vmem:[%s2364_s4 + $0x490] sm:$0xff]  ;;  %v1363_v18 = vld [vmem:[%s2364_s4 + $0x508] sm:$0xff] }
  0x58   : > { %811 = vmatpush.msrb.mxu2 %v431_v39  ;;  %837 = vmatpush.msra.mxu1 %v457_v40  ;;  %v1401_v39 = vld [vmem:[%s2364_s4 + $0x638] sm:$0xff]  ;;  %v1386_v40 = vld [vmem:[%s2364_s4 + $0x5c0] sm:$0xff] }
  0x59   : > { %792 = vmatpush.msra.mxu0 %v391_v41  ;;  %946 = vmatpush.msra.mxu3 %v1372_v42  ;;  %v1346_v41 = vld [vmem:[%s2364_s4 + $0x480] sm:$0xff]  ;;  %v1361_v42 = vld [vmem:[%s2364_s4 + $0x4f8] sm:$0xff] }
  0x5a   : > { %812 = vmatpush.msrb.mxu2 %v429_v46  ;;  %838 = vmatpush.msra.mxu1 %v455_v44  ;;  %v1417_v46 = vld [vmem:[%s2364_s4 + $0x6b8] sm:$0xff]  ;;  %v927_v44 = vrot.slane %v1749_v33, 2 }
  0x5b   : > { %1343 = vmatmul.msk.f32.gmra.mxu2 %vm562_vm5, %v1751_v34  ;;  %793 = vmatpush.msra.mxu0 %v389_v48  ;;  %v928_v48 = vrot.slane %v1751_v34, 2 }
  0x5c   : > { %947 = vmatpush.msra.mxu3 %v1370_v50  ;;  %794 = vmatmul.f32.vlgmr.msra.gmra.mxu0 %v1790_v54  ;;  %v924_v54 = vrot.slane %v1822_v12, 2  ;;  %v1359_v50 = vld [vmem:[%s2364_s4 + $0x4e8] sm:$0xff] }
  0x5d   : > { %813 = vmatpush.msrb.mxu2 %v427_v51  ;;  %967 = vmatpush.msrb.mxu0 %v1408_v52  ;;  %v1397_v51 = vld [vmem:[%s2364_s4 + $0x618] sm:$0xff]  ;;  %v1382_v52 = vld [vmem:[%s2364_s4 + $0x5a0] sm:$0xff] }
  0x5e   : > { %728 = vmatmul.f32.gmra.mxu1 %v1792_v57  ;;  %751 = vmatmul.f32.gmra.mxu3 %v1835_v15  ;;  %v2117_v3 = vsel %vm920_vm11, %v924_v54, %v925_v62  ;;  %v1393_v54 = vld [vmem:[%s2364_s4 + $0x5f8] sm:$0xff]  ;;  %v1378_v62 = vld [vmem:[%s2364_s4 + $0x580] sm:$0xff] }
  0x5f   : > { %948 = vmatpush.msra.mxu3 %v1368_v58  ;;  %814 = vmatpush.msrb.mxu2 %v425_v59  ;;  %v1395_v58 = vld [vmem:[%s2364_s4 + $0x608] sm:$0xff]  ;;  %v1380_v59 = vld [vmem:[%s2364_s4 + $0x590] sm:$0xff] }
  0x60   : > { %968 = vmatpush.msrb.mxu0 %v1406_v60  ;;  %839 = vmatpush.msra.mxu1 %v453_v61  ;;  %v929_v60 = vsel %vm920_vm11, %v927_v44, %v928_v48  ;;  %v1355_v61 = vld [vmem:[%s2364_s4 + $0x4c8] sm:$0xff] }
  0x61   : > { %949 = vmatpush.msra.mxu3 %v1366_v63  ;;  %815 = vmatpush.msrb.mxu2 %v423_v0  ;;  %v1413_v63 = vld [vmem:[%s2364_s4 + $0x698] sm:$0xff] }
  0x62   : > { %969 = vmatpush.msrb.mxu0 %v1404_v1  ;;  %1002 = vmatpush.msrb.mxu1 %v1416_v2  ;;  %v1353_v0 = vld [vmem:[%s2364_s4 + $0x4b8] sm:$0xff]  ;;  %v1391_v1 = vld [vmem:[%s2364_s4 + $0x5e8] sm:$0xff] }
  0x63   : > { %950 = vmatpush.msra.mxu3 %v1364_v7  ;;  %816 = vmatpush.msrb.mxu2 %v421_v8  ;;  %v1351_v2 = vld [vmem:[%s2364_s4 + $0x4a8] sm:$0xff]  ;;  %v1389_v8 = vld [vmem:[%s2364_s4 + $0x5d8] sm:$0xff] }
  0x64   : > { %970 = vmatpush.msrb.mxu0 %v1402_v9  ;;  %817 = vmatmul.f32.vlgmr.msrb.gmra.mxu2 %v1822_v12  ;;  %v1398_v12 = vld [vmem:[%s2364_s4 + $0x620] sm:$0xff]  ;;  %v1411_v7 = vld [vmem:[%s2364_s4 + $0x688] sm:$0xff]  ;;  %v1349_v9 = vld [vmem:[%s2364_s4 + $0x498] sm:$0xff] }
  0x65   : > { %951 = vmatpush.msra.mxu3 %v1362_v38  ;;  %1013 = vmatpush.msra.mxu2 %v1377_v11  ;;  %v935_v38 = vsel %vm920_vm11, %v928_v48, %v934_v6  ;;  %v1347_v11 = vld [vmem:[%s2364_s4 + $0x488] sm:$0xff] }
  0x66   : > { %797 = vmatmul.f32.gmra.mxu0 %v1792_v57  ;;  %1003 = vmatpush.msrb.mxu1 %v1414_v55  ;;  %v1396_v57 = vld [vmem:[%s2364_s4 + $0x610] sm:$0xff]  ;;  %v1385_v55 = vld [vmem:[%s2364_s4 + $0x5b8] sm:$0xff] }
  0x67   : > { %971 = vmatpush.msrb.mxu0 %v1400_v13  ;;  %952 = vmatpush.msra.mxu3 %v1360_v14  ;;  %v1383_v13 = vld [vmem:[%s2364_s4 + $0x5a8] sm:$0xff]  ;;  %v1381_v14 = vld [vmem:[%s2364_s4 + $0x598] sm:$0xff] }
  0x68   : > { %1014 = vmatpush.msra.mxu2 %v1375_v56  ;;  %1004 = vmatpush.msrb.mxu1 %v1412_v16  ;;  %v1379_v56 = vld [vmem:[%s2364_s4 + $0x588] sm:$0xff] }
  0x69   : > { %972 = vmatpush.msrb.mxu0 %v1398_v12  ;;  %953 = vmatpush.msra.mxu3 %v1358_v17 }
  0x6a   : > { %1015 = vmatpush.msra.mxu2 %v1373_v20  ;;  %1344 = vmatmul.msk.f32.vlgmr.msra.gmra.mxu1 %vm562_vm5, %v1749_v33  ;;  %v1415_v33 = vld [vmem:[%s2364_s4 + $0x6a8] sm:$0xff] }
  0x6b   : > { %973 = vmatpush.msrb.mxu0 %v1396_v57  ;;  %1005 = vmatpush.msrb.mxu1 %v1410_v53 }
  0x6c   : > { %954 = vmatpush.msra.mxu3 %v1356_v47  ;;  %1016 = vmatpush.msra.mxu2 %v1371_v22 }
  0x6d   : > { %1036 = vmatpush.msra.mxu1 %v1409_v23  ;;  %974 = vmatpush.msrb.mxu0 %v1394_v24 }
  0x6e   : > { %820 = vmatmul.f32.gmra.mxu2 %v1835_v15  ;;  %955 = vmatpush.msra.mxu3 %v1354_v4  ;;  %v1365_v15 = vld [vmem:[%s2364_s4 + $0x518] sm:$0xff] }
  0x6f   : > { %1017 = vmatpush.msra.mxu2 %v1369_v25  ;;  %1037 = vmatpush.msra.mxu1 %v1407_v27 }
  0x70   : > { %975 = vmatpush.msrb.mxu0 %v1392_v28  ;;  %956 = vmatpush.msra.mxu3 %v1352_v29 }
  0x71   : > { %1018 = vmatpush.msra.mxu2 %v1367_v5  ;;  %1038 = vmatpush.msra.mxu1 %v1405_v30 }
  0x72   : > { %976 = vmatpush.msrb.mxu0 %v1390_v31  ;;  %957 = vmatpush.msra.mxu3 %v1350_v32 }
  0x73   : > { %1019 = vmatpush.msra.mxu2 %v1365_v15  ;;  %1039 = vmatpush.msra.mxu1 %v1403_v35 }
  0x74   : > { %1345 = vmatmul.msk.f32.gmra.mxu1 %vm562_vm5, %v1751_v34  ;;  %977 = vmatpush.msrb.mxu0 %v1388_v36  ;;  %v1357_v34 = vld [vmem:[%s2364_s4 + $0x4d8] sm:$0xff] }
  0x75   : > { %958 = vmatpush.msra.mxu3 %v1348_v37  ;;  %1020 = vmatpush.msra.mxu2 %v1363_v18 }
  0x76   : > { %1040 = vmatpush.msra.mxu1 %v1401_v39  ;;  %978 = vmatpush.msrb.mxu0 %v1386_v40 }
  0x77   : > { %959 = vmatpush.msra.mxu3 %v1346_v41  ;;  %1021 = vmatpush.msra.mxu2 %v1361_v42 }
  0x78   : > { %1041 = vmatpush.msra.mxu1 %v1399_v43  ;;  %960 = vmatmul.f32.vlgmr.msra.gmra.mxu3 %v2074_v49 }
  0x79   : > { %979 = vmatpush.msrb.mxu0 %v1384_v45  ;;  %1071 = vmatpush.msrb.mxu3 %v1417_v46 }
  0x7a   : > { %1022 = vmatpush.msra.mxu2 %v1359_v50  ;;  %1042 = vmatpush.msra.mxu1 %v1397_v51 }
  0x7b   : > { %980 = vmatpush.msrb.mxu0 %v1382_v52  ;;  %1072 = vmatpush.msrb.mxu3 %v1415_v33 }
  0x7c   : > { %1023 = vmatpush.msra.mxu2 %v1357_v34  ;;  %1043 = vmatpush.msra.mxu1 %v1395_v58 }
  0x7d   : > { %981 = vmatpush.msrb.mxu0 %v1380_v59  ;;  %1418 = vmatmul.msk.f32.vlgmr.msrb.gmra.mxu1 %vm562_vm5, %v929_v60 }
  0x7e   : > { %1024 = vmatpush.msra.mxu2 %v1355_v61  ;;  %1044 = vmatpush.msra.mxu1 %v1393_v54 }
  0x7f   : > { %982 = vmatpush.msrb.mxu0 %v1378_v62  ;;  %1073 = vmatpush.msrb.mxu3 %v1413_v63 }
  0x80   : > { %983 = vmatmul.f32.vlgmr.msrb.gmra.mxu0 %v2117_v3  ;;  %1025 = vmatpush.msra.mxu2 %v1353_v0 }
  0x81   : > { %1045 = vmatpush.msra.mxu1 %v1391_v1  ;;  %963 = vmatmul.f32.gmra.mxu3 %v2130_v10 }
  0x82   : > { %1026 = vmatpush.msra.mxu2 %v1351_v2  ;;  %1074 = vmatpush.msrb.mxu3 %v1411_v7 }
  0x83   : > { %1046 = vmatpush.msra.mxu1 %v1389_v8 }
  0x84   : > { %1027 = vmatpush.msra.mxu2 %v1349_v9 }
  0x85   : > { %1047 = vmatpush.msra.mxu1 %v1387_v26 }
  0x86   : > { %1419 = vmatmul.msk.f32.gmra.mxu1 %vm562_vm5, %v935_v38  ;;  %1028 = vmatpush.msra.mxu2 %v1347_v11 }
  0x87   : > { %1048 = vmatpush.msra.mxu1 %v1385_v55  ;;  %1029 = vmatmul.f32.vlgmr.msra.gmra.mxu2 %v2074_v49 }
  0x88   : > { %986 = vmatmul.f32.gmra.mxu0 %v2172_v21 }
  0x89   : > { %1049 = vmatpush.msra.mxu1 %v1383_v13  ;;  %1420 = vmatmul.msk.f32.vlgmr.msrb.gmra.mxu3 %vm562_vm5, %v929_v60 }
  0x8b   : > { %1050 = vmatpush.msra.mxu1 %v1381_v14 }
  0x8d   : > { %1051 = vmatpush.msra.mxu1 %v1379_v56 }
  0x8e   : > { %1052 = vmatmul.f32.vlgmr.msra.gmra.mxu1 %v2117_v3 }
  0x8f   : > { %1032 = vmatmul.f32.gmra.mxu2 %v2130_v10 }
  0x91   : > { %1421 = vmatmul.msk.f32.gmra.mxu3 %vm562_vm5, %v935_v38 }
  0x96   : > { %1055 = vmatmul.f32.gmra.mxu1 %v2172_v21 }
  0xaf   : > { %v584_v12 = vpop.f32.mrf.mxu0 }
  0xb2   : > { %v630_v49 = vpop.f32.mrf.mxu2 }
  0xb3   : > { %v607_v16 = vpop.f32.mrf.mxu1 }
  0xb4   : > { %v608_v30 = vadd.f32 %v607_v16, %v584_v12 }
  0xb6   : > { %v631_v32 = vadd.f32 %v630_v49, %v608_v30 }
  0xb9   : > { %v587_v20 = vpop.f32.mrf.mxu0 }
  0xbb   : > { %v610_v19 = vpop.f32.mrf.mxu1 }
  0xbc   : > { %v633_v17 = vpop.f32.mrf.mxu2  ;;  %v611_v18 = vadd.f32 %v610_v19, %v587_v20 }
  0xbe   : > { %v634_v42 = vadd.f32 %v633_v17, %v611_v18 }
  0xc1   : > { %v653_v53 = vpop.f32.mrf.mxu3 }
  0xc4   : > { %v676_v57 = vpop.f32.mrf.mxu2 }
  0xc5   : > { %v699_v22 = vpop.f32.mrf.mxu0  ;;  %v677_v46 = vadd.f32 %v676_v57, %v653_v53 }
  0xc7   : > { %v700_v58 = vadd.f32 %v699_v22, %v677_v46 }
  0xcc   : > { %v679_v23 = vpop.f32.mrf.mxu2 }
  0xcd   : > { %v656_v24 = vpop.f32.mrf.mxu3 }
  0xce   : > { %v680_v60 = vadd.f32 %v679_v23, %v656_v24 }
  0xcf   : > { %v702_v3 = vpop.f32.mrf.mxu0 }
  0xd0   : > { %v703_v6 = vadd.f32 %v702_v3, %v680_v60 }
  0xd1   : > { %v726_v47 = vpop.f32.mrf.mxu1 }
  0xd2   : > { %v727_v35 = vadd.f32 %v726_v47, %v631_v32 }
  0xd4   : > { %v772_v25 = vpop.f32.mrf.mxu2 }
  0xd7   : > { %v749_v27 = vpop.f32.mrf.mxu3 }
  0xd8   : > { %v750_v39 = vadd.f32 %v749_v27, %v727_v35 }
  0xd9   : > { %v795_v28 = vpop.f32.mrf.mxu0 }
  0xda   : > { %v773_v43 = vadd.f32 %v772_v25, %v750_v39  ;;  %v796_v61 = vadd.f32 %v795_v28, %v700_v58  ;;  %v1110_v39 = vlaneseq }
  0xdb   : > { %v729_v4 = vpop.f32.mrf.mxu1 }
  0xdc   : > { %v730_v44 = vadd.f32 %v729_v4, %v634_v42  ;;  %vm1112_vm13 = vcmp.lt.s32.totalorder %v1110_v39, 256 }
  0xde   : > { %v775_v21 = vpop.f32.mrf.mxu2 }
  0xe1   : > { %v752_v5 = vpop.f32.mrf.mxu3 }
  0xe2   : > { %v753_v52 = vadd.f32 %v752_v5, %v730_v44 }
  0xe3   : > { %v798_v31 = vpop.f32.mrf.mxu0 }
  0xe4   : > { %v776_v54 = vadd.f32 %v775_v21, %v753_v52  ;;  %v799_v11 = vadd.f32 %v798_v31, %v703_v6 }
  0xe7   : > { %v841_v10 = vpop.f32.mrf.mxu1  ;;  %v818_v15 = vpop.f32.mrf.mxu2 }
  0xe8   : > { %v819_v63 = vadd.f32 %v818_v15, %v796_v61 }
  0xea   : > { %v842_v9 = vadd.f32 %v841_v10, %v819_v63 }
  0xf1   : > { %v844_v29 = vpop.f32.mrf.mxu1  ;;  %v821_v48 = vpop.f32.mrf.mxu2 }
  0xf2   : > { %v822_v56 = vadd.f32 %v821_v48, %v799_v11 }
  0xf4   : > { %v845_v57 = vadd.f32 %v844_v29, %v822_v56 }
  0xfa   : > { %v1007_v36 = vpop.f32.mrf.mxu1 }
  0xfb   : > { %v961_v37 = vpop.f32.mrf.mxu3 }
  0xfd   : > { %v984_v40 = vpop.f32.mrf.mxu0 }
  0xfe   : > { %v985_v41 = vadd.f32 %v984_v40, %v961_v37 }
 0x100   : > { %v1008_v45 = vadd.f32 %v1007_v36, %v985_v41 }
 0x102   : > { %v1082_v50 = vadd.f32 %v1008_v45, %v773_v43 }
 0x103   : > { %v1010_v51 = vpop.f32.mrf.mxu1 }
 0x104   : > { %1086 = vst [vmem:[%s2344_s8] sm:$0xff] %v1082_v50  ;;  %v964_v33 = vpop.f32.mrf.mxu3  ;;  %v1115_v55 = vmul.f32 %v1082_v50, %v1082_v50 }
 0x105   : > { %v987_v34 = vpop.f32.mrf.mxu0 }
 0x106   : > { %v988_v59 = vadd.f32 %v987_v34, %v964_v33 }
 0x108   : > { %v1011_v62 = vadd.f32 %v1010_v51, %v988_v59 }
 0x10a   : > { %v1084_v0 = vadd.f32 %v1011_v62, %v776_v54  ;;  %v1030_v1 = vpop.f32.mrf.mxu2 }
 0x10b   : > { %v1053_v2 = vpop.f32.mrf.mxu1 }
 0x10c   : > { %1088 = vst [vmem:[%s2344_s8 + $0x10] sm:$0xff] %v1084_v0  ;;  %v1054_v7 = vadd.f32 %v1053_v2, %v1030_v1  ;;  %v1076_v8 = vpop.f32.mrf.mxu3  ;;  %v1117_v26 = vmul.f32 %v1084_v0, %v1084_v0  ;;  %v1090_v13 = vadd.f32 %v1084_v0, %v1082_v50 }
 0x10e   : > { %v1077_v38 = vadd.f32 %v1076_v8, %v1054_v7  ;;  %v1119_v49 = vadd.f32 %v1117_v26, %v1115_v55  ;;  %v1091_v17 = vrot.slane %v1090_v13, 4 }
 0x110   : > { %v1083_v14 = vadd.f32 %v1077_v38, %v842_v9  ;;  %v1120_v53 = vrot.slane %v1119_v49, 4  ;;  %v1092_v22 = vadd.f32 %v1091_v17, %v1090_v13 }
 0x112   : > { %1087 = vst [vmem:[%s2344_s8 + $0x8] sm:$0xff] %v1083_v14  ;;  %v1033_v16 = vpop.f32.mrf.mxu2  ;;  %v1121_v24 = vadd.f32 %v1120_v53, %v1119_v49  ;;  %v1116_v4 = vmul.f32 %v1083_v14, %v1083_v14  ;;  %v1093_v10 = vrot.slane %v1092_v22, 2 }
 0x113   : > { %v1056_v12 = vpop.f32.mrf.mxu1 }
 0x114   : > { %v1057_v19 = vadd.f32 %v1056_v12, %v1033_v16  ;;  %v1079_v20 = vpop.f32.mrf.mxu3  ;;  %v1122_v21 = vrot.slane %v1121_v24, 2  ;;  %v1094_v31 = vadd.f32 %v1093_v10, %v1092_v22 }
 0x116   : > { %v1080_v47 = vadd.f32 %v1079_v20, %v1057_v19  ;;  %v1123_v29 = vadd.f32 %v1122_v21, %v1121_v24  ;;  %v1095_v37 = vrot.slane %v1094_v31, 1 }
 0x118   : > { %v1085_v23 = vadd.f32 %v1080_v47, %v845_v57  ;;  %v1124_v41 = vrot.slane %v1123_v29, 1  ;;  %v1096_v45 = vadd.f32 %v1095_v37, %v1094_v31 }
 0x11a   : > { %1089 = vst [vmem:[%s2344_s8 + $0x18] sm:$0xff] %v1085_v23  ;;  %v1097_v3 = vadd.f32 %v1085_v23, %v1083_v14  ;;  %v1118_v25 = vmul.f32 %v1085_v23, %v1085_v23  ;;  %v1125_v48 = vadd.f32 %v1124_v41, %v1123_v29 }
 0x11c   : > { %v1098_v27 = vrot.slane %v1097_v3, 4  ;;  %v1126_v28 = vadd.f32 %v1118_v25, %v1116_v4 }
 0x11e   : > { %v1099_v5 = vadd.f32 %v1098_v27, %v1097_v3  ;;  %v1127_v30 = vrot.slane %v1126_v28, 4 }
 0x120   : > { %v1100_v32 = vrot.slane %v1099_v5, 2  ;;  %v1128_v15 = vadd.f32 %v1127_v30, %v1126_v28 }
 0x122   : > { %v1101_v35 = vadd.f32 %v1100_v32, %v1099_v5  ;;  %v1129_v36 = vrot.slane %v1128_v15, 2 }
 0x124   : > { %v1102_v18 = vrot.slane %v1101_v35, 1  ;;  %v1130_v40 = vadd.f32 %v1129_v36, %v1128_v15 }
 0x126   : > { %v1103_v42 = vadd.f32 %v1102_v18, %v1101_v35  ;;  %v1131_v43 = vrot.slane %v1130_v40, 1 }
 0x128   : > { %v1106_v46 = vrot.slane %v1103_v42, 7  ;;  %v1132_v44 = vadd.f32 %v1131_v43, %v1130_v40 }
 0x12a   : > { %v1108_v50 = vsel %vm1107_vm12, %v1096_v45, %v1106_v46  ;;  %v1135_v51 = vrot.slane %v1132_v44, 7 }
 0x12b   : > { %1114 = vst.msk [vmem:[%s295_s12] sm:$0x3] %vm1112_vm13, %v1108_v50 }
 0x12c   : > { %v1136_v52 = vsel %vm1107_vm12, %v1125_v48, %v1135_v51 }
 0x12d   : > { %1138 = vst.msk [vmem:[%s299_s14] sm:$0x3] %vm1112_vm13, %v1136_v52 }
 0x12e PF: > { %s18_s24 = sadd.s32 1, %s1440_s24  }
 0x12f   : > { %p15_p4 = scmp.ge.s32.totalorder %s18_s24, 4  }
 0x131   :  { %17 = sbr.rel (!%p15_p4) target bundleno = 1 (0x1), region = 96 }

// kernel: tile.53
= control target key start
LH: loop header
LB: loop body
LE: loop exit
PB: predicated region body
PF: predicated region fallthrough
CT: control target
= control target key end

     0   :  { %s22_s0 = inlined_call_operand.vmem [shape: f32[16], index: 0, kind: input, shape index: {}]   ;;  %s23_s1 = inlined_call_operand.vmem [shape: f32[2,16], index: 1, kind: output, shape index: {}]  }
   0x1   :  { %v4_v0 = vld [vmem:[%s22_s0] ss:$0 sm:$0xff] }
   0x2   :  { %5 = vst [vmem:[%s23_s1] sm:$0x3] %v4_v0 }

// kernel: tile.54
= control target key start
LH: loop header
LB: loop body
LE: loop exit
PB: predicated region body
PF: predicated region fallthrough
CT: control target
= control target key end

     0   :  { %vm7_vm0 = vcmask 130048   ;;  %vm13_vm1 = vcmask 261248   ;;  %s39_s0 = inlined_call_operand.vmem [shape: f32[2,16], index: 0, kind: input, shape index: {}]   ;;  %s40_s1 = inlined_call_operand.vmem [shape: f32[1,32], index: 1, kind: output, shape index: {}]  }
   0x1   :  { %v4_v0 = vld [vmem:[%s39_s0] sm:$0x3]  ;;  %s22_s0 = smov 16  }
   0x2   :  { %5 = vst [vmem:[#allocation1] sm:$0x3] %v4_v0 }
   0x9   :  { %v10_v1 = vld [vmem:[#allocation1 + $0x1] sm:$0x1]   ;;  %v6_v2 = vld [vmem:[#allocation1] sm:$0x1]  }
   0xa   :  { %11 = vrot.lane.b32.xlu0 %v10_v1, %s22_s0  ;;  %8 = vst.msk [vmem:[#allocation0] sm:$0x1] %vm7_vm0, %v6_v2  }
  0x7c   :  { %v12_v3 = vpop.permute.xlu0 %11  }
  0x7d   :  { %14 = vst.msk [vmem:[#allocation0] sm:$0x1] %vm13_vm1, %v12_v3  }
  0x84   :  { %v17_v4 = vld [vmem:[#allocation0] sm:$0x1] }
  0x85   :  { %20 = vst [vmem:[%s40_s1] sm:$0x1] %v17_v4 }

// kernel: hffc_block.7
= control target key start
LH: loop header
LB: loop body
LE: loop exit
PB: predicated region body
PF: predicated region fallthrough
CT: control target
= control target key end

     0   :  { %8 = vsyncpa [#allocation3], 0  ;;  %s736_s0 = inlined_call_operand.vmem [shape: f32[2,8,2,8,32], index: 0, kind: input, shape index: {}]   ;;  %s737_s1 = inlined_call_operand.vmem [shape: f32[1,32], index: 1, kind: input, shape index: {}]   ;;  %s738_s2 = inlined_call_operand.vmem [shape: f32[1,32], index: 2, kind: input, shape index: {}]   ;;  %s739_s3 = inlined_call_operand.hbm [shape: f32[2,8,8,16], index: 3, kind: output, shape index: {}]  }
   0x1   :  { %10 = vsyncpa [#allocation3 + $0x1], 0  ;;  %s553_s12 = smov 0   ;;  %s555_s13 = smov 0  }
   0x2   :  { %s557_s14 = smov 0   ;;  %s559_s15 = smov 0  }
   0x3 LB: > { %s574_s16 = sadd.s32 4294967295, %s528_s15   ;;  %s408_s17 = sadd.s32 4294967294, %s528_s15   ;;  %s528_s15 = sphi %s559_s15, %s745_s15   ;;  %s524_s14 = sphi %s557_s14, %s744_s14   ;;  %s520_s13 = sphi %s555_s13, %s743_s13   ;;  %s516_s12 = sphi %s553_s12, %s742_s12  }
   0x4   : > { %s578_s18 = sadd.s32 1, %s528_s15   ;;  %s91_s19 = sadd.s32 1, %s524_s14 }
   0x5   : > { %s88_s20 = ssub.s32 %s528_s15, %s578_s18  ;;  %p101_p0 = scmp.ne.s32.totalorder %s524_s14, %s520_s13 }
   0x6   : > { %p89_p1 = scmp.eq.s32.totalorder %s88_s20, 0  ;;  %p102_p2 = scmp.eq.s32.totalorder %s574_s16, 1 }
   0x7   : > { %p107_p3 = scmp.ne.s32.totalorder %s520_s13, %s516_s12  ;;  %p108_p4 = scmp.eq.s32.totalorder %s408_s17, 1 }
   0x8   : > { %s589_s21 = scalar_select %p89_p1, %s524_s14, %s91_s19  }
   0x9   : > { %p591_p5 = por %p102_p2, %p101_p0  ;;  %p595_p6 = por %p108_p4, %p107_p3 }
   0xa   : > { %p411_p7 = scmp.ge.s32.totalorder %s528_s15, 1  ;;  %p140_p8 = scmp.lt.s32.totalorder %s528_s15, 3 }
   0xc   : > { %p141_p9 = pnand %p411_p7, %p140_p8 }
   0xd   : > { %p164_p10 = scmp.lt.s32.totalorder (!%p141_p9), %s574_s16, 1  ;;  %s530_s6 = smov (!%p141_p9), 112  }
   0xe   : > { %144 = sbr.rel (%p141_p9) target bundleno = 171 (0xab), region = 32  ;;  %s161_s7 = sand.u32 (!%p141_p9), 1, %s520_s13  }
   0xf   : > { %s412_s8 = sshll.u32 (!%p141_p9), %s161_s7, 6  ;;  %s421_s10 = sshll.u32 (!%p141_p9), %s574_s16, 6 }
  0x10   : > { %s163_s9 = scalar_lea.vmem (!%p141_p9), [#allocation2], %s412_s8  ;;  %s342_s19 = scalar_lea.hbm (!%p141_p9), %s739_s3, %s421_s10 }
  0x11   : > { %s343_s20 = sshll.u32 (!%p141_p9), %s163_s9, 4  ;;  %s486_s29 = scalar_lea.hbm (!%p141_p9), %s739_s3, 128  ;;  %s344_s20 = int_to_ptr.vmem [resolvable:$true] %s343_s20 }
  0x13   : > { %s165_s24 = scalar_select %p164_p10, %s574_s16, 1  ;;  %v606_v0 = vld [vmem:[%s737_s1] ss:$0 sm:$0xff] }
  0x14   : > { %v616_v1 = vld [vmem:[%s738_s2] ss:$0 sm:$0xff]  ;;  %s331_s16 = scalar_lea.sflag [#allocation3], %s161_s7 }
  0x15   : > { %s420_s27 = sshll.u32 %s165_s24, 7  ;;  %s345_s24 = sshll.u32 %s342_s19, 4  ;;  %s346_s24 = int_to_ptr.hbm [resolvable:$true] %s345_s24 }
  0x16   : > { %s611_s30 = scalar_lea.vmem %s736_s0, %s420_s27  ;;  %s480_s25 = sshra.s32 %s346_s24, 4  ;;  %s481_s25 = int_to_ptr.hbm [resolvable:$true] %s480_s25 }
  0x17   : > { %v173_v2 = vld [vmem:[%s611_s30 + $0x20] sm:$0xff]  ;;  %v174_v3 = vld [vmem:[%s611_s30 + $0x28] sm:$0xff]  ;;  %v175_v9 = vld [vmem:[%s611_s30 + $0x30] sm:$0xff]  ;;  %s482_s26 = scalar_lea.hbm %s481_s25, 64  ;;  %p487_p0 = scmp.lt.s32.totalorder %s481_s25, %s739_s3 }
  0x18   : > { %v169_v4 = vld [vmem:[%s611_s30] sm:$0xff]  ;;  %v193_v5 = vmul.f32 %v606_v0, %v173_v2  ;;  %v194_v6 = vmul.f32 %v606_v0, %v174_v3  ;;  %v170_v7 = vld [vmem:[%s611_s30 + $0x8] sm:$0xff]  ;;  %v176_v10 = vld [vmem:[%s611_s30 + $0x38] sm:$0xff]  ;;  %v195_v12 = vmul.f32 %v606_v0, %v175_v9  ;;  %p483_p11 = scmp.ne.s32.totalorder %s481_s25, %s482_s26  ;;  %p488_p1 = scmp.lt.s32.totalorder %s486_s29, %s482_s26 }
  0x19   : > { %v189_v8 = vmul.f32 %v606_v0, %v169_v4  ;;  %v190_v11 = vmul.f32 %v606_v0, %v170_v7  ;;  %v196_v13 = vmul.f32 %v606_v0, %v176_v10  ;;  %v171_v14 = vld [vmem:[%s611_s30 + $0x10] sm:$0xff]  ;;  %v172_v15 = vld [vmem:[%s611_s30 + $0x18] sm:$0xff]  ;;  %v181_v32 = vld [vmem:[%s611_s30 + $0x60] sm:$0xff] }
  0x1a   : > { %v213_v16 = vadd.f32 %v616_v1, %v193_v5  ;;  %v214_v17 = vadd.f32 %v616_v1, %v194_v6  ;;  %v191_v19 = vmul.f32 %v606_v0, %v171_v14  ;;  %v215_v21 = vadd.f32 %v616_v1, %v195_v12  ;;  %v183_v30 = vld [vmem:[%s611_s30 + $0x70] sm:$0xff]  ;;  %v184_v31 = vld [vmem:[%s611_s30 + $0x78] sm:$0xff]  ;;  %v182_v44 = vld [vmem:[%s611_s30 + $0x68] sm:$0xff]  ;;  %p484_p12 = pnand %p483_p11, %p591_p5  ;;  %p489_p2 = por %p488_p1, %p487_p0 }
  0x1b   : > { %v209_v18 = vadd.f32 %v616_v1, %v189_v8  ;;  %v210_v20 = vadd.f32 %v616_v1, %v190_v11  ;;  %v216_v22 = vadd.f32 %v616_v1, %v196_v13  ;;  %v192_v23 = vmul.f32 %v606_v0, %v172_v15  ;;  %v177_v46 = vld [vmem:[%s611_s30 + $0x40] sm:$0xff]  ;;  %v178_v56 = vld [vmem:[%s611_s30 + $0x48] sm:$0xff]  ;;  %v179_v60 = vld [vmem:[%s611_s30 + $0x50] sm:$0xff] }
  0x1c   : > { %vm229_vm0 = vcmp.ge.f32.partialorder %v213_v16, 0.0  ;;  %vm230_vm1 = vcmp.ge.f32.partialorder %v214_v17, 0.0  ;;  %v245_v24 = vmul.f32 0.01, %v213_v16  ;;  %v246_v25 = vmul.f32 0.01, %v214_v17  ;;  %p485_p13 = pneg %p484_p12 }
  0x1d   : > { %vm225_vm2 = vcmp.ge.f32.partialorder %v209_v18, 0.0  ;;  %vm226_vm3 = vcmp.ge.f32.partialorder %v210_v20, 0.0  ;;  %v241_v26 = vmul.f32 0.01, %v209_v18  ;;  %v242_v27 = vmul.f32 0.01, %v210_v20 }
  0x1e   : > { %v261_v28 = vsel %vm229_vm0, %v213_v16, %v245_v24  ;;  %v262_v29 = vsel %vm230_vm1, %v214_v17, %v246_v25  ;;  %vm231_vm4 = vcmp.ge.f32.partialorder %v215_v21, 0.0  ;;  %vm232_vm5 = vcmp.ge.f32.partialorder %v216_v22, 0.0  ;;  %v180_v5 = vld [vmem:[%s611_s30 + $0x58] sm:$0xff]  ;;  %p490_p3 = pnand %p489_p2, %p485_p13 }
  0x1f   : > { %v643_v33 = vmax.f32 %v261_v28, %v262_v29  ;;  %v257_v34 = vsel %vm225_vm2, %v209_v18, %v241_v26  ;;  %v258_v35 = vsel %vm226_vm3, %v210_v20, %v242_v27  ;;  %v247_v36 = vmul.f32 0.01, %v215_v21 }
  0x20   : > { %v645_v37 = vmax.f32 %v257_v34, %v258_v35  ;;  %v248_v38 = vmul.f32 0.01, %v216_v22  ;;  %v211_v39 = vadd.f32 %v616_v1, %v191_v19  ;;  %v212_v40 = vadd.f32 %v616_v1, %v192_v23 }
  0x21   : > { %293 = vrot.lane.b32.xlu1 %v643_v33, %s530_s6  ;;  %v263_v41 = vsel %vm231_vm4, %v215_v21, %v247_v36  ;;  %v203_v42 = vmul.f32 %v606_v0, %v183_v30  ;;  %v204_v43 = vmul.f32 %v606_v0, %v184_v31  ;;  %v201_v45 = vmul.f32 %v606_v0, %v181_v32 }
  0x22   : > { %289 = vrot.lane.b32.xlu0 %v645_v37, %s530_s6  ;;  %v264_v47 = vsel %vm232_vm5, %v216_v22, %v248_v38  ;;  %vm227_vm6 = vcmp.ge.f32.partialorder %v211_v39, 0.0  ;;  %vm228_vm7 = vcmp.ge.f32.partialorder %v212_v40, 0.0  ;;  %v243_v48 = vmul.f32 0.01, %v211_v39 }
  0x23   : > { %v659_v49 = vmax.f32 %v263_v41, %v264_v47  ;;  %v244_v50 = vmul.f32 0.01, %v212_v40  ;;  %v223_v51 = vadd.f32 %v616_v1, %v203_v42  ;;  %v224_v52 = vadd.f32 %v616_v1, %v204_v43 }
  0x24   : > { %v259_v53 = vsel %vm227_vm6, %v211_v39, %v243_v48  ;;  %v202_v54 = vmul.f32 %v606_v0, %v182_v44  ;;  %v221_v55 = vadd.f32 %v616_v1, %v201_v45  ;;  %v197_v57 = vmul.f32 %v606_v0, %v177_v46 }
  0x25   : > { %v260_v58 = vsel %vm228_vm7, %v212_v40, %v244_v50  ;;  %vm239_vm8 = vcmp.ge.f32.partialorder %v223_v51, 0.0  ;;  %vm240_vm9 = vcmp.ge.f32.partialorder %v224_v52, 0.0  ;;  %v255_v59 = vmul.f32 0.01, %v223_v51 }
  0x26   : > { %v668_v61 = vmax.f32 %v259_v53, %v260_v58  ;;  %v256_v62 = vmul.f32 0.01, %v224_v52  ;;  %v222_v63 = vadd.f32 %v616_v1, %v202_v54  ;;  %vm237_vm10 = vcmp.ge.f32.partialorder %v221_v55, 0.0 }
  0x27   : > { %v253_v2 = vmul.f32 0.01, %v221_v55  ;;  %v198_v3 = vmul.f32 %v606_v0, %v178_v56  ;;  %v217_v4 = vadd.f32 %v616_v1, %v197_v57  ;;  %v271_v6 = vsel %vm239_vm8, %v223_v51, %v255_v59 }
  0x28   : > { %vm238_vm11 = vcmp.ge.f32.partialorder %v222_v63, 0.0  ;;  %v254_v7 = vmul.f32 0.01, %v222_v63  ;;  %v199_v8 = vmul.f32 %v606_v0, %v179_v60  ;;  %v272_v9 = vsel %vm240_vm9, %v224_v52, %v256_v62 }
  0x29   : > { %295 = vrot.lane.b32.xlu1 %v659_v49, %s530_s6  ;;  %v269_v10 = vsel %vm237_vm10, %v221_v55, %v253_v2  ;;  %v218_v11 = vadd.f32 %v616_v1, %v198_v3  ;;  %vm233_vm12 = vcmp.ge.f32.partialorder %v217_v4, 0.0  ;;  %v249_v13 = vmul.f32 0.01, %v217_v4 }
  0x2a   : > { %291 = vrot.lane.b32.xlu0 %v668_v61, %s530_s6  ;;  %v270_v12 = vsel %vm238_vm11, %v222_v63, %v254_v7  ;;  %v200_v14 = vmul.f32 %v606_v0, %v180_v5  ;;  %v219_v15 = vadd.f32 %v616_v1, %v199_v8  ;;  %v280_v19 = vmax.f32 %v271_v6, %v272_v9 }
  0x2b   : > { %vm234_vm13 = vcmp.ge.f32.partialorder %v218_v11, 0.0  ;;  %v250_v16 = vmul.f32 0.01, %v218_v11  ;;  %v265_v17 = vsel %vm233_vm12, %v217_v4, %v249_v13  ;;  %v279_v20 = vmax.f32 %v269_v10, %v270_v12 }
  0x2c   : > { %v220_v18 = vadd.f32 %v616_v1, %v200_v14  ;;  %v251_v22 = vmul.f32 0.01, %v219_v15  ;;  %vm235_vm14 = vcmp.ge.f32.partialorder %v219_v15, 0.0  ;;  %vm321_vm0 = vcmask 130048  }
  0x2d   : > { %v266_v21 = vsel %vm234_vm13, %v218_v11, %v250_v16 }
  0x2e   : > { %v277_v23 = vmax.f32 %v265_v17, %v266_v21  ;;  %vm236_vm15 = vcmp.ge.f32.partialorder %v220_v18, 0.0  ;;  %v252_v24 = vmul.f32 0.01, %v220_v18  ;;  %v267_v0 = vsel %vm235_vm14, %v219_v15, %v251_v22 }
  0x30   : > { %297 = vrot.lane.b32.xlu2 %v277_v23, %s530_s6  ;;  %v268_v25 = vsel %vm236_vm15, %v220_v18, %v252_v24 }
  0x31   : > { %303 = vrot.lane.b32.xlu1 %v280_v19, %s530_s6  ;;  %v278_v26 = vmax.f32 %v267_v0, %v268_v25 }
  0x32   : > { %301 = vrot.lane.b32.xlu0 %v279_v20, %s530_s6 }
  0x38   : > { %299 = vrot.lane.b32.xlu2 %v278_v26, %s530_s6 }
  0x8a   : > { %v298_v1 = vpop.permute.xlu2 %297 }
  0x8b   : > { %v317_v27 = vmax.f32 %v277_v23, %v298_v1 }
  0x8d   : > { %326 = vst.msk [vmem:[%s163_s9 + $0x20] sm:$0xff] %vm321_vm0, %v317_v27 }
  0x92   : > { %v300_v28 = vpop.permute.xlu2 %299 }
  0x93   : > { %v294_v29 = vpop.permute.xlu1 %293  ;;  %v318_v30 = vmax.f32 %v278_v26, %v300_v28 }
  0x94   : > { %v315_v31 = vmax.f32 %v643_v33, %v294_v29  ;;  %v290_v32 = vpop.permute.xlu0 %289 }
  0x95   : > { %v313_v34 = vmax.f32 %v645_v37, %v290_v32  ;;  %327 = vst.msk [vmem:[%s163_s9 + $0x28] sm:$0xff] %vm321_vm0, %v318_v30 }
  0x96   : > { %324 = vst.msk [vmem:[%s163_s9 + $0x10] sm:$0xff] %vm321_vm0, %v315_v31 }
  0x97   : > { %322 = vst.msk [vmem:[%s163_s9] sm:$0xff] %vm321_vm0, %v313_v34 }
  0x9b   : > { %v296_v35 = vpop.permute.xlu1 %295 }
  0x9c   : > { %v316_v36 = vmax.f32 %v659_v49, %v296_v35  ;;  %v292_v38 = vpop.permute.xlu0 %291 }
  0x9d   : > { %v314_v39 = vmax.f32 %v668_v61, %v292_v38 }
  0x9e   : > { %325 = vst.msk [vmem:[%s163_s9 + $0x18] sm:$0xff] %vm321_vm0, %v316_v36 }
  0x9f   : > { %323 = vst.msk [vmem:[%s163_s9 + $0x8] sm:$0xff] %vm321_vm0, %v314_v39 }
  0xa3   : > { %v304_v33 = vpop.permute.xlu1 %303 }
  0xa4   : > { %v320_v37 = vmax.f32 %v280_v19, %v304_v33  ;;  %v302_v40 = vpop.permute.xlu0 %301 }
  0xa5   : > { %v319_v41 = vmax.f32 %v279_v20, %v302_v40 }
  0xa6   : > { %329 = vst.msk [vmem:[%s163_s9 + $0x38] sm:$0xff] %vm321_vm0, %v320_v37 }
  0xa7   : > { %328 = vst.msk [vmem:[%s163_s9 + $0x30] sm:$0xff] %vm321_vm0, %v319_v41 }
  0xa8   : > { %493 = shalt.err (!%p490_p3)
}
  0xa9   : > { %s531_s5 = smov 128   ;;  %s532_s6 = smov 8  }
  0xaa   : > { %422 = dma.vmem_to_hbm [thread:$0]  (%p591_p5), %s344_s20, 1024, %s346_s24, %s331_s16, %s531_s5, %s531_s5, %s532_s6  }
  0xab PF: > { %p428_p4 = scmp.ge.s32.totalorder %s528_s15, 2  ;;  %s360_s7 = sand.u32 1, %s516_s12  }
  0xac   : > { %s361_s8 = scalar_lea.sflag [#allocation3], %s360_s7 }
  0xad   : > { %p425_p7 = pnand %p428_p4, %p595_p6 }
  0xaf   : > { %p426_p8 = pneg %p425_p7 }
  0xb1   : > { %511 = dma.done.wait (%p426_p8), %s361_s8, 1024  }
  0xb2   : > { %513 = vsyncadd (%p426_p8), %s361_s8, 4294966272  ;;  %p13_p9 = scmp.ge.s32.totalorder %s578_s18, 4   ;;  %s742_s12 = smov %s520_s13 }
  0xb3   : > { %s743_s13 = smov %s524_s14  ;;  %s744_s14 = smov %s589_s21 }
  0xb4   : > { %s745_s15 = smov %s578_s18  ;;  %15 = sbr.rel (!%p13_p9) target bundleno = 3 (0x3), region = 67 }
  0xb9   :  { %367 = vsyncpa [#allocation3], 1 }
  0xba   :  { %369 = vsyncpa [#allocation3 + $0x1], 1 }

</bundles_post_ra>
